<compile_context>
chip_gen: v7x
topology: tpu7x:2x2x1
jax: 0.10.0
libtpu: 0.0.40
codegen_flags: <defaults>
</compile_context>

<pallas_src>
import functools
import math

import jax
import jax.numpy as jnp
from jax.experimental import pallas as pl
from jax.experimental.pallas import tpu as pltpu


def _round_up(x, m):
    return ((x + m - 1) // m) * m


def _stem_attention_kernel(S, D, Fv, Fq,
                           x_ref, wd_ref, bd_ref, wv_ref, bv_ref,
                           out_ref, qkv_ref):
    TB = x_ref.shape[0]
    F = qkv_ref.shape[-1]
    inv_4s = 1.0 / float(4 * S)

    # x_ref: (TB, 4S, D) packed as [drums; vocals; bass; other] along rows.
    drums = x_ref[:, :S, :].reshape(TB * S, D)          # (TB*S, D)
    vbo = x_ref[:, S:, :].reshape(TB * 3 * S, D)        # (TB*3S, D)

    # Fused [Wv | Wq | Wk] projections: 2 matmuls instead of 12.  The
    # 1/sqrt(d_model) score scale is already folded into the q columns.
    qkv_d = (jnp.dot(drums, wd_ref[...], preferred_element_type=jnp.float32)
             + bd_ref[...])                             # (TB*S, F)
    qkv_v = (jnp.dot(vbo, wv_ref[...], preferred_element_type=jnp.float32)
             + bv_ref[...])                             # (TB*3S, F)

    # Row-slice stores into VMEM scratch instead of an axis-0 concatenate.
    qkv_ref[:, :S, :] = qkv_d.reshape(TB, S, F)
    qkv_ref[:, S:, :] = qkv_v.reshape(TB, 3 * S, F)

    # Lane-aligned column views (Fv, Fq are multiples of 128); pad columns of
    # q/k/v are zero, so using the padded widths is exact.
    v = qkv_ref[:, :, :Fv]                # (TB, 4S, Fv)
    q = qkv_ref[:, :, Fv:Fv + Fq]         # (TB, 4S, Fq)
    k = qkv_ref[:, :, Fv + Fq:]           # (TB, 4S, Fk)

    # scores = (q / sqrt(d_model)) @ k^T, contracting dims last (no transpose).
    scores = jnp.einsum('bqh,bkh->bqk', q, k,
                        preferred_element_type=jnp.float32)   # (TB, 4S, 4S)

    # TODO(synk): dropout on scores is eval-mode identity here.

    # Numerically-stable softmax statistics.
    m = jnp.max(scores, axis=-1, keepdims=True)         # (TB, 4S, 1)
    p = jnp.exp(scores - m)                             # (TB, 4S, 4S)
    l = jnp.sum(p, axis=-1, keepdims=True)              # (TB, 4S, 1)

    # Fused softmax-normalize + row-mean on the MXU:
    #   mean_q softmax(scores) = ((1/(4S)) / l)^T @ p
    r = pl.reciprocal(l, approx=True) * inv_4s          # (TB, 4S, 1)
    r_row = r.reshape(TB, 1, 4 * S)                     # == transpose (last dim is 1)
    w = jnp.einsum('bxq,bqk->bxk', r_row, p,
                   preferred_element_type=jnp.float32)  # (TB, 1, 4S)

    # mean_rows(attn @ v) == mean_rows(attn) @ v (exact; dropout is identity).
    out = jnp.einsum('bxk,bkf->bxf', w, v,
                     preferred_element_type=jnp.float32)  # (TB, 1, Fv)
    out_ref[...] = out[:, 0, :D].astype(out_ref.dtype)


def stem_attention(inputs, params, d_model, *, batch_block=8):
    drums = inputs["drums"]
    B, S, D = drums.shape
    assert D == d_model
    assert S % 8 == 0, "seq length must be a multiple of 8 (f32 sublane tile)"
    Dh = d_model // 8

    # Lane-padded fused segment widths, ordered [v | q | k] so every column
    # slice in the kernel starts at a multiple of 128 lanes.
    Fv = _round_up(D, 128)
    Fq = _round_up(Dh, 128)
    Fk = _round_up(Dh, 128)

    scale = 1.0 / math.sqrt(float(d_model))

    def pad_cols(a, width):
        return jnp.pad(a, ((0, 0), (0, width - a.shape[1])))

    def fuse(v_arr, q_arr, k_arr):
        # Fold the 1/sqrt(d_model) score scale into the q columns (one-time).
        return jnp.concatenate(
            [pad_cols(v_arr, Fv), pad_cols(q_arr * scale, Fq),
             pad_cols(k_arr, Fk)], axis=1)

    w_d = fuse(params["wdv"], params["wdq"], params["wdk"])
    b_d = fuse(params["bdv"], params["bdq"], params["bdk"])
    w_v = fuse(params["wvv"], params["wvq"], params["wvk"])
    b_v = fuse(params["bvv"], params["bvq"], params["bvk"])
    F = w_d.shape[1]

    # Pack the 4 stems along the seq axis (matches the torch.cat order) ->
    # one lane/sublane-dense DMA slab per grid step.
    x = jnp.concatenate([inputs["drums"], inputs["vocals"],
                         inputs["bass"], inputs["other"]], axis=1)  # (B,4S,D)

    # Batch blocking: TB batch elements per grid step; zero-pad and slice back.
    TB = _round_up(max(1, batch_block), 8)
    B_pad = _round_up(B, TB)
    if B_pad != B:
        x = jnp.pad(x, ((0, B_pad - B), (0, 0), (0, 0)))

    kernel = functools.partial(_stem_attention_kernel, S, D, Fv, Fq)

    out = pl.pallas_call(
        kernel,
        out_shape=jax.ShapeDtypeStruct((B_pad, D), jnp.float32),
        grid_spec=pltpu.PrefetchScalarGridSpec(
            num_scalar_prefetch=0,
            grid=(B_pad // TB,),
            in_specs=[
                pl.BlockSpec((TB, 4 * S, D), lambda b: (b, 0, 0)),
                # Constant index maps -> weights DMA'd once, not per step.
                pl.BlockSpec(w_d.shape, lambda b: (0, 0)),
                pl.BlockSpec(b_d.shape, lambda b: (0, 0)),
                pl.BlockSpec(w_v.shape, lambda b: (0, 0)),
                pl.BlockSpec(b_v.shape, lambda b: (0, 0)),
            ],
            out_specs=pl.BlockSpec((TB, D), lambda b: (b, 0)),
            scratch_shapes=[pltpu.VMEM((TB, 4 * S, F), jnp.float32)],
        ),
        compiler_params=pltpu.CompilerParams(
            dimension_semantics=("parallel",),
            vmem_limit_bytes=48 * 1024 * 1024,
        ),
    )(x, w_d, b_d, w_v, b_v)
    return out[:B]


def stem_attention_ref(inputs, params, d_model):
    """Pure-JAX reference mirroring the PyTorch forward (eval mode)."""
    def lin(x, w, b):
        return x @ w + b

    drums, vocals, bass, other = (inputs["drums"], inputs["vocals"],
                                  inputs["bass"], inputs["other"])
    Dq = lin(drums, params["wdq"], params["bdq"])
    Dk = lin(drums, params["wdk"], params["bdk"])
    Dv = lin(drums, params["wdv"], params["bdv"])
    Vq = lin(vocals, params["wvq"], params["bvq"])
    Vk = lin(vocals, params["wvk"], params["bvk"])
    Vv = lin(vocals, params["wvv"], params["bvv"])
    Bq = lin(bass, params["wvq"], params["bvq"])
    Bk = lin(bass, params["wvk"], params["bvk"])
    Bv = lin(bass, params["wvv"], params["bvv"])
    Oq = lin(other, params["wvq"], params["bvq"])
    Ok = lin(other, params["wvk"], params["bvk"])
    Ov = lin(other, params["wvv"], params["bvv"])
    q = jnp.concatenate([Dq, Vq, Bq, Oq], axis=-2)
    k = jnp.concatenate([Dk, Vk, Bk, Ok], axis=-2)
    v = jnp.concatenate([Dv, Vv, Bv, Ov], axis=-2)
    scores = jnp.einsum("bqh,bkh->bqk", q, k) / (float(d_model) ** 0.5)
    attn = jax.nn.softmax(scores, axis=-1)
    out = jnp.einsum("bqk,bkd->bqd", attn, v)
    return out.mean(axis=-2)


def init_params(key, d_model):
    d_head = d_model // 8
    names_shapes = [
        ("wdq", (d_model, d_head)), ("bdq", (1, d_head)),
        ("wdk", (d_model, d_head)), ("bdk", (1, d_head)),
        ("wdv", (d_model, d_model)), ("bdv", (1, d_model)),
        ("wvq", (d_model, d_head)), ("bvq", (1, d_head)),
        ("wvk", (d_model, d_head)), ("bvk", (1, d_head)),
        ("wvv", (d_model, d_model)), ("bvv", (1, d_model)),
        # O_* and B_* layers exist in __init__ but are unused in forward;
        # initialized here for shape fidelity only.
        ("woq", (d_model, d_head)), ("boq", (1, d_head)),
        ("wok", (d_model, d_head)), ("bok", (1, d_head)),
        ("wov", (d_model, d_model)), ("bov", (1, d_model)),
        ("wbq", (d_model, d_head)), ("bbq", (1, d_head)),
        ("wbk", (d_model, d_head)), ("bbk", (1, d_head)),
        ("wbv", (d_model, d_model)), ("bbv", (1, d_model)),
    ]
    params = {}
    keys = jax.random.split(key, len(names_shapes))
    for (name, shape), k in zip(names_shapes, keys):
        scale = 1.0 / (shape[0] ** 0.5)
        params[name] = (jax.random.uniform(k, shape, jnp.float32,
                                           minval=-1.0, maxval=1.0) * scale)
    return params


if __name__ == "__main__":
    d_model = 32
    batch, seq = 2, 8

    key = jax.random.PRNGKey(0)
    k_p, k_d, k_v, k_b, k_o = jax.random.split(key, 5)
    params = init_params(k_p, d_model)

    inputs = {
        "drums": jax.random.normal(k_d, (batch, seq, d_model), jnp.float32),
        "vocals": jax.random.normal(k_v, (batch, seq, d_model), jnp.float32),
        "bass": jax.random.normal(k_b, (batch, seq, d_model), jnp.float32),
        "other": jax.random.normal(k_o, (batch, seq, d_model), jnp.float32),
    }

    out = stem_attention(inputs, params, d_model)
    out = jax.block_until_ready(out)

    ref = stem_attention_ref(inputs, params, d_model)
    assert out.shape == (batch, d_model)
    # Tolerance accounts for the EUP approximate-reciprocal softmax divide.
    assert jnp.allclose(out, ref, atol=1e-2, rtol=1e-2), (
        f"max abs err {jnp.max(jnp.abs(out - ref))}")

    print("KERNEL_OK")
</pallas_src>

<mosaic_0001>
module attributes {stable_mosaic.version = 11 : i64} {
  func.func @_stem_attention_kernel(%arg0: i32, %arg1: memref<8x32x32xf32, #tpu.memory_space<vmem>>, %arg2: memref<32x384xf32, #tpu.memory_space<vmem>>, %arg3: memref<1x384xf32, #tpu.memory_space<vmem>>, %arg4: memref<32x384xf32, #tpu.memory_space<vmem>>, %arg5: memref<1x384xf32, #tpu.memory_space<vmem>>, %arg6: memref<8x32xf32, #tpu.memory_space<vmem>>, %arg7: memref<8x32x384xf32, #tpu.memory_space<vmem>>) attributes {dimension_semantics = [#tpu.dimension_semantics<parallel>], iteration_bounds = array<i64: 1>, scalar_prefetch = 0 : i64, scratch_operands = 1 : i64, tpu.core_type = #tpu.core_type<tc>, window_params = [{transform_indices = @transform_0, window_bounds = array<i64: 8, 32, 32>}, {pipeline_mode = #tpu.pipeline_mode<synchronous>, transform_indices = @transform_1, window_bounds = array<i64: 32, 384>}, {pipeline_mode = #tpu.pipeline_mode<synchronous>, transform_indices = @transform_2, window_bounds = array<i64: 1, 384>}, {pipeline_mode = #tpu.pipeline_mode<synchronous>, transform_indices = @transform_3, window_bounds = array<i64: 32, 384>}, {pipeline_mode = #tpu.pipeline_mode<synchronous>, transform_indices = @transform_4, window_bounds = array<i64: 1, 384>}, {transform_indices = @transform_5, window_bounds = array<i64: 8, 32>}]} {
    %c0 = arith.constant 0 : index
    %c0_0 = arith.constant 0 : index
    %c0_1 = arith.constant 0 : index
    %0 = vector.load %arg1[%c0, %c0_0, %c0_1] : memref<8x32x32xf32, #tpu.memory_space<vmem>>, vector<8x8x32xf32>
    %1 = vector.shape_cast %0 : vector<8x8x32xf32> to vector<64x32xf32>
    %c0_2 = arith.constant 0 : index
    %c8 = arith.constant 8 : index
    %c0_3 = arith.constant 0 : index
    %2 = vector.load %arg1[%c0_2, %c8, %c0_3] : memref<8x32x32xf32, #tpu.memory_space<vmem>>, vector<8x24x32xf32>
    %3 = vector.shape_cast %2 : vector<8x24x32xf32> to vector<192x32xf32>
    %c0_4 = arith.constant 0 : index
    %c0_5 = arith.constant 0 : index
    %4 = vector.load %arg2[%c0_4, %c0_5] : memref<32x384xf32, #tpu.memory_space<vmem>>, vector<32x384xf32>
    %cst = arith.constant dense<0.000000e+00> : vector<64x384xf32>
    %5 = tpu.matmul %1, %4, %cst {dimension_numbers = #tpu.dot_dimension_numbers<[1], [0], [0], [1], [0, 0, 1, 1], [], []>} : vector<64x32xf32>, vector<32x384xf32>, vector<64x384xf32> -> vector<64x384xf32>
    %c0_6 = arith.constant 0 : index
    %c0_7 = arith.constant 0 : index
    %6 = vector.load %arg3[%c0_6, %c0_7] : memref<1x384xf32, #tpu.memory_space<vmem>>, vector<1x384xf32>
    %7 = vector.broadcast %6 : vector<1x384xf32> to vector<64x384xf32>
    %8 = arith.addf %5, %7 : vector<64x384xf32>
    %c0_8 = arith.constant 0 : index
    %c0_9 = arith.constant 0 : index
    %9 = vector.load %arg4[%c0_8, %c0_9] : memref<32x384xf32, #tpu.memory_space<vmem>>, vector<32x384xf32>
    %cst_10 = arith.constant dense<0.000000e+00> : vector<192x384xf32>
    %10 = tpu.matmul %3, %9, %cst_10 {dimension_numbers = #tpu.dot_dimension_numbers<[1], [0], [0], [1], [0, 0, 1, 1], [], []>} : vector<192x32xf32>, vector<32x384xf32>, vector<192x384xf32> -> vector<192x384xf32>
    %c0_11 = arith.constant 0 : index
    %c0_12 = arith.constant 0 : index
    %11 = vector.load %arg5[%c0_11, %c0_12] : memref<1x384xf32, #tpu.memory_space<vmem>>, vector<1x384xf32>
    %12 = vector.broadcast %11 : vector<1x384xf32> to vector<192x384xf32>
    %13 = arith.addf %10, %12 : vector<192x384xf32>
    %14 = vector.shape_cast %8 : vector<64x384xf32> to vector<8x8x384xf32>
    %c0_13 = arith.constant 0 : index
    %c0_14 = arith.constant 0 : index
    %c0_15 = arith.constant 0 : index
    %15 = vector.load %arg7[%c0_13, %c0_14, %c0_15] : memref<8x32x384xf32, #tpu.memory_space<vmem>>, vector<8x8x384xf32>
    tpu.vector_store %arg7[%c0_13, %c0_14, %c0_15], %14 {strides = array<i32>} : memref<8x32x384xf32, #tpu.memory_space<vmem>>, vector<8x8x384xf32>,
    %16 = vector.shape_cast %13 : vector<192x384xf32> to vector<8x24x384xf32>
    %c0_16 = arith.constant 0 : index
    %c8_17 = arith.constant 8 : index
    %c0_18 = arith.constant 0 : index
    %17 = vector.load %arg7[%c0_16, %c8_17, %c0_18] : memref<8x32x384xf32, #tpu.memory_space<vmem>>, vector<8x24x384xf32>
    tpu.vector_store %arg7[%c0_16, %c8_17, %c0_18], %16 {strides = array<i32>} : memref<8x32x384xf32, #tpu.memory_space<vmem>>, vector<8x24x384xf32>,
    %c0_19 = arith.constant 0 : index
    %c0_20 = arith.constant 0 : index
    %c0_21 = arith.constant 0 : index
    %18 = vector.load %arg7[%c0_19, %c0_20, %c0_21] : memref<8x32x384xf32, #tpu.memory_space<vmem>>, vector<8x32x128xf32>
    %c0_22 = arith.constant 0 : index
    %c0_23 = arith.constant 0 : index
    %c128 = arith.constant 128 : index
    %19 = vector.load %arg7[%c0_22, %c0_23, %c128] : memref<8x32x384xf32, #tpu.memory_space<vmem>>, vector<8x32x128xf32>
    %c0_24 = arith.constant 0 : index
    %c0_25 = arith.constant 0 : index
    %c256 = arith.constant 256 : index
    %20 = vector.load %arg7[%c0_24, %c0_25, %c256] : memref<8x32x384xf32, #tpu.memory_space<vmem>>, vector<8x32x128xf32>
    "tpu.trace_start"() <{level = 10 : i32, message = "bqh,bkh->bqk"}> : () -> ()
    %cst_26 = arith.constant dense<0.000000e+00> : vector<8x32x32xf32>
    %21 = tpu.matmul %19, %20, %cst_26 {dimension_numbers = #tpu.dot_dimension_numbers<[2], [2], [1], [1], [0, 0, 0, 1, 1, 1], [0], [0]>} : vector<8x32x128xf32>, vector<8x32x128xf32>, vector<8x32x32xf32> -> vector<8x32x32xf32>
    "tpu.trace_stop"() : () -> ()
    %cst_27 = arith.constant dense<0xFF800000> : vector<8x32xf32>
    %22 = vector.multi_reduction <maximumf>, %21, %cst_27 [2] : vector<8x32x32xf32> to vector<8x32xf32>
    %23 = vector.shape_cast %22 : vector<8x32xf32> to vector<8x32x1xf32>
    %24 = vector.broadcast %23 : vector<8x32x1xf32> to vector<8x32x32xf32>
    %25 = arith.subf %21, %24 : vector<8x32x32xf32>
    %26 = math.exp %25 : vector<8x32x32xf32>
    %cst_28 = arith.constant dense<0.000000e+00> : vector<8x32xf32>
    %27 = vector.multi_reduction <add>, %26, %cst_28 [2] : vector<8x32x32xf32> to vector<8x32xf32>
    %28 = vector.shape_cast %27 : vector<8x32xf32> to vector<8x32x1xf32>
    %29 = tpu.reciprocal %28 {approx = true} : vector<8x32x1xf32> -> vector<8x32x1xf32>
    %cst_29 = arith.constant 3.125000e-02 : f32
    %30 = vector.broadcast %cst_29 : f32 to vector<8x32x1xf32>
    %31 = arith.mulf %29, %30 : vector<8x32x1xf32>
    %32 = vector.shape_cast %31 : vector<8x32x1xf32> to vector<8x1x32xf32>
    "tpu.trace_start"() <{level = 10 : i32, message = "bxq,bqk->bxk"}> : () -> ()
    %cst_30 = arith.constant dense<0.000000e+00> : vector<8x1x32xf32>
    %33 = tpu.matmul %32, %26, %cst_30 {dimension_numbers = #tpu.dot_dimension_numbers<[2], [1], [1], [2], [0, 0, 0, 1, 1, 2], [0], [0]>} : vector<8x1x32xf32>, vector<8x32x32xf32>, vector<8x1x32xf32> -> vector<8x1x32xf32>
    "tpu.trace_stop"() : () -> ()
    "tpu.trace_start"() <{level = 10 : i32, message = "bxk,bkf->bxf"}> : () -> ()
    %cst_31 = arith.constant dense<0.000000e+00> : vector<8x1x128xf32>
    %34 = tpu.matmul %33, %18, %cst_31 {dimension_numbers = #tpu.dot_dimension_numbers<[2], [1], [1], [2], [0, 0, 0, 1, 1, 2], [0], [0]>} : vector<8x1x32xf32>, vector<8x32x128xf32>, vector<8x1x128xf32> -> vector<8x1x128xf32>
    "tpu.trace_stop"() : () -> ()
    %35 = vector.extract_strided_slice %34 {offsets = [0, 0, 0], sizes = [8, 1, 32], strides = [1, 1, 1]} : vector<8x1x128xf32> to vector<8x1x32xf32>
    %36 = vector.shape_cast %35 : vector<8x1x32xf32> to vector<8x32xf32>
    %c0_32 = arith.constant 0 : index
    %c0_33 = arith.constant 0 : index
    %37 = vector.load %arg6[%c0_32, %c0_33] : memref<8x32xf32, #tpu.memory_space<vmem>>, vector<8x32xf32>
    tpu.vector_store %arg6[%c0_32, %c0_33], %36 {strides = array<i32>} : memref<8x32xf32, #tpu.memory_space<vmem>>, vector<8x32xf32>,
    return
  }
  func.func @transform_0(%arg0: i32) -> (i32, i32, i32) {
    %c0_i32 = arith.constant 0 : i32
    %c0_i32_0 = arith.constant 0 : i32
    %c0_i32_1 = arith.constant 0 : i32
    return %arg0, %c0_i32, %c0_i32_0 : i32, i32, i32
  }
  func.func @transform_1(%arg0: i32) -> (i32, i32) {
    %c0_i32 = arith.constant 0 : i32
    %c0_i32_0 = arith.constant 0 : i32
    %c0_i32_1 = arith.constant 0 : i32
    return %c0_i32, %c0_i32_0 : i32, i32
  }
  func.func @transform_2(%arg0: i32) -> (i32, i32) {
    %c0_i32 = arith.constant 0 : i32
    %c0_i32_0 = arith.constant 0 : i32
    %c0_i32_1 = arith.constant 0 : i32
    return %c0_i32, %c0_i32_0 : i32, i32
  }
  func.func @transform_3(%arg0: i32) -> (i32, i32) {
    %c0_i32 = arith.constant 0 : i32
    %c0_i32_0 = arith.constant 0 : i32
    %c0_i32_1 = arith.constant 0 : i32
    return %c0_i32, %c0_i32_0 : i32, i32
  }
  func.func @transform_4(%arg0: i32) -> (i32, i32) {
    %c0_i32 = arith.constant 0 : i32
    %c0_i32_0 = arith.constant 0 : i32
    %c0_i32_1 = arith.constant 0 : i32
    return %c0_i32, %c0_i32_0 : i32, i32
  }
  func.func @transform_5(%arg0: i32) -> (i32, i32) {
    %c0_i32 = arith.constant 0 : i32
    %c0_i32_0 = arith.constant 0 : i32
    return %arg0, %c0_i32 : i32, i32
  }
}

</mosaic_0001>

<bundles_post_ra>
// kernel: tpu_custom_call.1
= control target key start
LH: loop header
LB: loop body
LE: loop exit
PB: predicated region body
PF: predicated region fallthrough
CT: control target
= control target key end

     0   :  { %10 = vsyncpa [#allocation4], 0  ;;  %s5556_s0 = inlined_call_operand.hbm [shape: f32[8,32,32], index: 0, kind: input, shape index: {}]   ;;  %s5557_s1 = inlined_call_operand.hbm [shape: f32[32,384], index: 1, kind: input, shape index: {}]   ;;  %s5558_s2 = inlined_call_operand.vmem [shape: f32[1,384], index: 2, kind: input, shape index: {}]   ;;  %s5559_s3 = inlined_call_operand.hbm [shape: f32[32,384], index: 3, kind: input, shape index: {}]   ;;  %s5560_s4 = inlined_call_operand.vmem [shape: f32[1,384], index: 4, kind: input, shape index: {}]   ;;  %s5561_s5 = inlined_call_operand.hbm [shape: f32[8,32], index: 5, kind: output, shape index: {}]  }
   0x1   :  { %11 = vsyncpa [#allocation7], 0 }
   0x2   :  { %12 = vsyncpa [#allocation5], 0  ;;  %s4525_s18 = smov [#allocation6]   ;;  %s4431_s22 = scalar_lea.hbm %s5557_s1, 1536 }
   0x3   :  { %s30_s19 = sshll.u32 %s4525_s18, 4  ;;  %p4432_p0 = scmp.ne.s32.totalorder %s5557_s1, %s4431_s22  ;;  %s31_s19 = int_to_ptr.vmem [resolvable:$true] %s30_s19 }
   0x4   :  { %p4435_p1 = scmp.lt.u32.totalorder %s4431_s22, %s5557_s1 }
   0x6   :  { %p4437_p2 = pnand %p4435_p1, %p4432_p0 }
   0x8   :  { %4440 = shalt.err (!%p4437_p2)
}
   0x9   :  { %s4441_s27 = scalar_lea.vmem %s31_s19, 1536  ;;  %p4446_p4 = scmp.lt.s32.totalorder %s31_s19, %s31_s19 }
   0xa   :  { %p4442_p3 = scmp.ne.s32.totalorder %s31_s19, %s4441_s27  ;;  %p4447_p5 = scmp.lt.s32.totalorder %s4441_s27, %s4441_s27 }
   0xc   :  { %p4448_p6 = por %p4447_p5, %p4446_p4 }
   0xe   :  { %p4449_p7 = pnand %p4448_p6, %p4442_p3 }
  0x10   :  { %4452 = shalt.err (!%p4449_p7)
}
  0x11   :  { %s4526_s28 = smov 384   ;;  %s4527_s29 = smov 24  }
  0x12   :  { %36 = dma.hbm_to_vmem [thread:$0]  %s5557_s1, 1536, %s31_s19, [#allocation7], %s4526_s28, %s4526_s28, %s4527_s29  }
  0x13   :  { %s4528_s7 = smov [#allocation3]   ;;  %s4453_s11 = scalar_lea.hbm %s5556_s0, 4096 }
  0x14   :  { %s18_s8 = sshll.u32 %s4528_s7, 4  ;;  %p4454_p8 = scmp.ne.s32.totalorder %s5556_s0, %s4453_s11  ;;  %s19_s8 = int_to_ptr.vmem [resolvable:$true] %s18_s8 }
  0x15   :  { %p4457_p9 = scmp.lt.u32.totalorder %s4453_s11, %s5556_s0 }
  0x17   :  { %p4459_p10 = pnand %p4457_p9, %p4454_p8 }
  0x19   :  { %4462 = shalt.err (!%p4459_p10)
}
  0x1a   :  { %s4463_s16 = scalar_lea.vmem %s19_s8, 4096  ;;  %p4468_p12 = scmp.lt.s32.totalorder %s19_s8, %s19_s8 }
  0x1b   :  { %p4464_p11 = scmp.ne.s32.totalorder %s19_s8, %s4463_s16  ;;  %p4469_p13 = scmp.lt.s32.totalorder %s4463_s16, %s4463_s16 }
  0x1d   :  { %p4470_p0 = por %p4469_p13, %p4468_p12 }
  0x1f   :  { %p4471_p1 = pnand %p4470_p0, %p4464_p11 }
  0x21   :  { %4474 = shalt.err (!%p4471_p1)
}
  0x22   :  { %s4529_s1 = smov 128   ;;  %s4530_s17 = smov 8  }
  0x23   :  { %24 = dma.hbm_to_vmem [thread:$0]  %s5556_s0, 4096, %s19_s8, [#allocation4], %s4529_s1, %s4529_s1, %s4530_s17  }
  0x24   :  { %s4531_s20 = smov [#allocation8]   ;;  %s4475_s24 = scalar_lea.hbm %s5559_s3, 1536 }
  0x25   :  { %s44_s21 = sshll.u32 %s4531_s20, 4  ;;  %p4476_p2 = scmp.ne.s32.totalorder %s5559_s3, %s4475_s24  ;;  %s45_s21 = int_to_ptr.vmem [resolvable:$true] %s44_s21 }
  0x26   :  { %p4479_p3 = scmp.lt.u32.totalorder %s4475_s24, %s5559_s3 }
  0x28   :  { %p4481_p4 = pnand %p4479_p3, %p4476_p2 }
  0x2a   :  { %4484 = shalt.err (!%p4481_p4)
}
  0x2b   :  { %s4485_s6 = scalar_lea.vmem %s45_s21, 1536  ;;  %p4490_p6 = scmp.lt.s32.totalorder %s45_s21, %s45_s21 }
  0x2c   :  { %p4486_p5 = scmp.ne.s32.totalorder %s45_s21, %s4485_s6  ;;  %p4491_p7 = scmp.lt.s32.totalorder %s4485_s6, %s4485_s6 }
  0x2e   :  { %p4492_p8 = por %p4491_p7, %p4490_p6 }
  0x30   :  { %p4493_p9 = pnand %p4492_p8, %p4486_p5 }
  0x32   :  { %4496 = shalt.err (!%p4493_p9)
}
  0x33   :  { %50 = dma.hbm_to_vmem [thread:$0]  %s5559_s3, 1536, %s45_s21, [#allocation7], %s4526_s28, %s4526_s28, %s4527_s29  }
  0x34   :  { %4519 = dma.done.wait [#allocation4], 4096  }
  0x35   :  { %4520 = vsyncadd [#allocation4], 4294963200 }
  0x36   :  { %4521 = dma.done.wait [#allocation7], 3072  }
  0x37   :  { %4522 = vsyncadd [#allocation7], 4294964224  ;;  %v5563_v0 = vmov 0.0   ;;  %v95_v1 = vld [vmem:[#allocation6 + $0x8] sm:$0xff]  ;;  %v98_v2 = vld [vmem:[#allocation6 + $0x20] sm:$0xff]  ;;  %vm123_vm0 = vcmask 261120  }
  0x38   :  { %212 = vmatprep.mubr.f32.mxu0 %v5563_v0  ;;  %v96_v3 = vld [vmem:[#allocation6 + $0x10] sm:$0xff]  ;;  %v4100_v4 = vpack.c.bf16 %v98_v2, %v95_v1  ;;  %v99_v5 = vld [vmem:[#allocation6 + $0x28] sm:$0xff]  ;;  %v94_v6 = vld [vmem:[#allocation6] sm:$0xff]  ;;  %vm4534_vm1 = vmmov 0   ;;  %vm2100_vm2 = vcmask 130112   ;;  %vm2107_vm3 = vcmask 195712  }
  0x39   :  { %v97_v7 = vld [vmem:[#allocation6 + $0x18] sm:$0xff]  ;;  %v4108_v8 = vpack.c.bf16 %v99_v5, %v96_v3  ;;  %v104_v11 = vld [vmem:[#allocation6 + $0x50] sm:$0xff]  ;;  %v102_v12 = vld [vmem:[#allocation6 + $0x40] sm:$0xff]  ;;  %vm2114_vm4 = vcmask 261312   ;;  %vm3446_vm5 = vcmask 1041409   ;;  %vm3449_vm6 = vcmask 1042434  }
  0x3a   :  { %v4102_v9 = vpack.c.bf16 %v97_v7, %v94_v6  ;;  %v101_v10 = vld [vmem:[#allocation6 + $0x38] sm:$0xff]  ;;  %4101 = vmatprep.subr.bf16.mxu0 %v4100_v4  ;;  %v100_v15 = vld [vmem:[#allocation6 + $0x30] sm:$0xff]  ;;  %v103_v16 = vld [vmem:[#allocation6 + $0x48] sm:$0xff]  ;;  %v5562_v6 = vlaneseq  ;;  %vm3452_vm7 = vcmask 1043459   ;;  %vm3455_vm8 = vcmask 1044484  }
  0x3b   :  { %v4104_v13 = vpack.c.bf16 %v104_v11, %v101_v10  ;;  %v105_v14 = vld [vmem:[#allocation6 + $0x58] sm:$0xff]  ;;  %4109 = vmatprep.subr.bf16.mxu1 %v4108_v8  ;;  %v4106_v18 = vpack.c.bf16 %v103_v16, %v100_v15  ;;  %v62_v19 = vld [vmem:[#allocation3] sm:$0xff]  ;;  %v367_v20 = vld [vmem:[#allocation8 + $0x8] sm:$0xff]  ;;  %vm3458_vm9 = vcmask 1045509   ;;  %vm3461_vm10 = vcmask 1046534  }
  0x3c   :  { %4103 = vmatpush1.bf16.msra.mxu0 %v4102_v9  ;;  %v4112_v17 = vpack.c.bf16 %v105_v14, %v102_v12  ;;  %4111 = vmatpush3.bf16.msra.mxu1 %v4108_v8  ;;  %v370_v21 = vld [vmem:[#allocation8 + $0x20] sm:$0xff]  ;;  %v369_v24 = vld [vmem:[#allocation8 + $0x18] sm:$0xff]  ;;  %v376_v26 = vld [vmem:[#allocation8 + $0x50] sm:$0xff]  ;;  %v4705_v7 = vshrl.u32 %v5562_v6, 7  ;;  %vm3464_vm11 = vcmask 1047559  }
  0x3d   :  { %4105 = vmatprep.subr.bf16.mxu0 %v4104_v13  ;;  %3756 = vmatprep.mubr.msk.f32.mxu1 %vm123_vm0, %v62_v19  ;;  %v366_v22 = vld [vmem:[#allocation8] sm:$0xff]  ;;  %v4116_v23 = vpack.c.bf16 %v370_v21, %v367_v20  ;;  %v373_v25 = vld [vmem:[#allocation8 + $0x38] sm:$0xff]  ;;  %v372_v30 = vld [vmem:[#allocation8 + $0x30] sm:$0xff] }
  0x3e   :  { %4113 = vmatprep.subr.bf16.mxu1 %v4112_v17  ;;  %v63_v27 = vld [vmem:[#allocation3 + $0x20] sm:$0xff]  ;;  %v4118_v29 = vpack.c.bf16 %v369_v24, %v366_v22  ;;  %v4120_v31 = vpack.c.bf16 %v376_v26, %v373_v25  ;;  %v375_v32 = vld [vmem:[#allocation8 + $0x48] sm:$0xff]  ;;  %v368_v33 = vld [vmem:[#allocation8 + $0x10] sm:$0xff]  ;;  %v114_v8 = vsub.s32 1, %v4705_v7  ;;  %v110_v16 = vsub.s32 0, %v4705_v7 }
  0x3f   :  { %v64_v28 = vld [vmem:[#allocation3 + $0x40] sm:$0xff]  ;;  %v371_v34 = vld [vmem:[#allocation8 + $0x28] sm:$0xff]  ;;  %v377_v37 = vld [vmem:[#allocation8 + $0x58] sm:$0xff]  ;;  %v4122_v39 = vpack.c.bf16 %v375_v32, %v372_v30 }
  0x40   :  { %4107 = vmatpush1.bf16.msra.mxu0 %v4106_v18  ;;  %4115 = vmatpush3.bf16.msra.mxu1 %v4112_v17  ;;  %v4124_v35 = vpack.c.bf16 %v371_v34, %v368_v33  ;;  %v374_v36 = vld [vmem:[#allocation8 + $0x40] sm:$0xff]  ;;  %v70_v45 = vld [vmem:[#allocation3 + $0x8] sm:$0xff]  ;;  %v71_v46 = vld [vmem:[#allocation3 + $0x10] sm:$0xff] }
  0x41   :  { %4117 = vmatprep.subr.bf16.mxu1 %v4116_v23  ;;  %v65_v38 = vld [vmem:[#allocation3 + $0x60] sm:$0xff]  ;;  %v4128_v41 = vpack.c.bf16 %v377_v37, %v374_v36  ;;  %v72_v47 = vld [vmem:[#allocation3 + $0x18] sm:$0xff]  ;;  %v73_v48 = vld [vmem:[#allocation3 + $0x28] sm:$0xff] }
  0x42   :  { %v66_v40 = vld [vmem:[#allocation3 + $0x80] sm:$0xff]  ;;  %4125 = vmatprep.subr.bf16.mxu0 %v4124_v35  ;;  %v74_v49 = vld [vmem:[#allocation3 + $0x30] sm:$0xff]  ;;  %v75_v50 = vld [vmem:[#allocation3 + $0x38] sm:$0xff] }
  0x43   :  { %3484 = vmatmul.mubr.msk.f32.vlgmr.msra.gmra.mrb[0].mxu0 %vm123_vm0, %v62_v19  ;;  %3757 = vmatmul.mubr.msk.f32.vlgmr.msra.gmra.mrb[0].mxu1 %vm123_vm0, %v63_v27  ;;  %v67_v42 = vld [vmem:[#allocation3 + $0xa0] sm:$0xff]  ;;  %v76_v51 = vld [vmem:[#allocation3 + $0x48] sm:$0xff]  ;;  %v77_v52 = vld [vmem:[#allocation3 + $0x50] sm:$0xff] }
  0x44   :  { %218 = vmatprep.mubr.f32.mxu0 %v5563_v0  ;;  %3759 = vmatprep.mubr.msk.f32.mxu1 %vm123_vm0, %v64_v28  ;;  %v68_v43 = vld [vmem:[#allocation3 + $0xc0] sm:$0xff]  ;;  %v78_v53 = vld [vmem:[#allocation3 + $0x58] sm:$0xff]  ;;  %v79_v54 = vld [vmem:[#allocation3 + $0x68] sm:$0xff] }
  0x45   :  { %4119 = vmatpush1.bf16.msra.mxu1 %v4118_v29  ;;  %4127 = vmatpush3.bf16.msra.mxu0 %v4124_v35  ;;  %v69_v44 = vld [vmem:[#allocation3 + $0xe0] sm:$0xff]  ;;  %v80_v55 = vld [vmem:[#allocation3 + $0x70] sm:$0xff]  ;;  %v81_v56 = vld [vmem:[#allocation3 + $0x78] sm:$0xff] }
  0x46   :  { %4121 = vmatprep.subr.bf16.mxu1 %v4120_v31  ;;  %4129 = vmatprep.subr.bf16.mxu0 %v4128_v41  ;;  %v82_v57 = vld [vmem:[#allocation3 + $0x88] sm:$0xff]  ;;  %v83_v58 = vld [vmem:[#allocation3 + $0x90] sm:$0xff]  ;;  %v84_v59 = vld [vmem:[#allocation3 + $0x98] sm:$0xff] }
  0x47   :  { %3485 = vmatmul.mubr.msk.f32.gmra.mrb[2].mxu0 %vm123_vm0, %v63_v27  ;;  %3760 = vmatmul.mubr.msk.f32.gmra.mrb[2].mxu1 %vm123_vm0, %v65_v38  ;;  %v85_v60 = vld [vmem:[#allocation3 + $0xa8] sm:$0xff]  ;;  %v86_v61 = vld [vmem:[#allocation3 + $0xb0] sm:$0xff]  ;;  %v87_v62 = vld [vmem:[#allocation3 + $0xb8] sm:$0xff] }
  0x48   :  { %224 = vmatprep.mubr.f32.mxu0 %v5563_v0  ;;  %3762 = vmatprep.mubr.msk.f32.mxu1 %vm123_vm0, %v66_v40  ;;  %v88_v63 = vld [vmem:[#allocation3 + $0xc8] sm:$0xff]  ;;  %v89_v1 = vld [vmem:[#allocation3 + $0xd0] sm:$0xff]  ;;  %v90_v2 = vld [vmem:[#allocation3 + $0xd8] sm:$0xff] }
  0x49   :  { %4123 = vmatpush1.bf16.msra.mxu1 %v4122_v39  ;;  %4131 = vmatpush3.bf16.msra.mxu0 %v4128_v41  ;;  %v91_v3 = vld [vmem:[#allocation3 + $0xe8] sm:$0xff]  ;;  %v92_v4 = vld [vmem:[#allocation3 + $0xf0] sm:$0xff]  ;;  %v93_v5 = vld [vmem:[#allocation3 + $0xf8] sm:$0xff] }
  0x4a   :  { %v106_v9 = vld [vmem:[%s5558_s2] sm:$0x7] }
  0x4b   :  { %3486 = vmatmul.mubr.msk.f32.gmra.mrb[4].mxu0 %vm123_vm0, %v64_v28  ;;  %3763 = vmatmul.mubr.msk.f32.gmra.mrb[4].mxu1 %vm123_vm0, %v67_v42  ;;  %v4713_v10 = vrot.slane %v106_v9, %v114_v8  ;;  %v111_v21 = vrot.slane %v106_v9, %v110_v16  ;;  %v4737_v28 = vld [vmem:[%s5560_s4] sm:$0x7]  ;;  %s4535_s4 = smov [#allocation9]  }
  0x4c   :  { %230 = vmatprep.mubr.f32.mxu0 %v5563_v0  ;;  %3765 = vmatprep.mubr.msk.f32.mxu1 %vm123_vm0, %v68_v43  ;;  %v4744_v33 = vrot.slane %v4737_v28, %v110_v16  ;;  %s3474_s8 = sshll.u32 %s4535_s4, 4  ;;  %s3475_s8 = int_to_ptr.vmem [resolvable:$true] %s3474_s8 }
  0x4d   :  { %s4497_s9 = scalar_lea.vmem %s3475_s8, 128  ;;  %p4502_p11 = scmp.lt.s32.totalorder %s3475_s8, %s3475_s8 }
  0x4e   :  { %p4498_p10 = scmp.ne.s32.totalorder %s3475_s8, %s4497_s9  ;;  %p4503_p12 = scmp.lt.s32.totalorder %s4497_s9, %s4497_s9 }
  0x4f   :  { %3487 = vmatmul.mubr.msk.f32.gmra.mrb[6].mxu0 %vm123_vm0, %v65_v38  ;;  %3766 = vmatmul.mubr.msk.f32.gmra.mrb[6].mxu1 %vm123_vm0, %v69_v44 }
  0x50   :  { %236 = vmatprep.mubr.f32.mxu0 %v5563_v0  ;;  %531 = vmatprep.mubr.f32.mxu1 %v5563_v0  ;;  %p4504_p13 = por %p4503_p12, %p4502_p11 }
  0x52   :  { %p4505_p0 = pnand %p4504_p13, %p4498_p10 }
  0x53   :  { %3488 = vmatmul.mubr.msk.f32.gmra.mrb[8].mxu0 %vm123_vm0, %v66_v40  ;;  %3500 = vmatmul.mubr.msk.f32.vlgmr.msra.gmra.mrb[8].mxu1 %vm123_vm0, %v70_v45 }
  0x54   :  { %242 = vmatprep.mubr.f32.mxu0 %v5563_v0  ;;  %537 = vmatprep.mubr.f32.mxu1 %v5563_v0 }
  0x57   :  { %3489 = vmatmul.mubr.msk.f32.gmra.mrb[10].mxu0 %vm123_vm0, %v67_v42  ;;  %3501 = vmatmul.mubr.msk.f32.gmra.mrb[10].mxu1 %vm123_vm0, %v71_v46 }
  0x58   :  { %248 = vmatprep.mubr.f32.mxu0 %v5563_v0  ;;  %543 = vmatprep.mubr.f32.mxu1 %v5563_v0 }
  0x5b   :  { %3490 = vmatmul.mubr.msk.f32.gmra.mrb[12].mxu0 %vm123_vm0, %v68_v43  ;;  %3502 = vmatmul.mubr.msk.f32.gmra.mrb[12].mxu1 %vm123_vm0, %v72_v47 }
  0x5c   :  { %254 = vmatprep.mubr.f32.mxu0 %v5563_v0  ;;  %549 = vmatprep.mubr.f32.mxu1 %v5563_v0 }
  0x5f   :  { %3491 = vmatmul.mubr.msk.f32.gmra.mrb[14].mxu0 %vm123_vm0, %v69_v44  ;;  %3503 = vmatmul.mubr.msk.f32.gmra.mrb[14].mxu1 %vm123_vm0, %v73_v48 }
  0x60   :  { %3776 = vmatprep.mubr.msk.f32.mxu0 %vm123_vm0, %v70_v45  ;;  %555 = vmatprep.mubr.f32.mxu1 %v5563_v0 }
  0x63   :  { %3777 = vmatmul.mubr.msk.f32.vlgmr.msra.gmra.mrb[16].mxu0 %vm123_vm0, %v71_v46  ;;  %3504 = vmatmul.mubr.msk.f32.gmra.mrb[16].mxu1 %vm123_vm0, %v74_v49 }
  0x64   :  { %3779 = vmatprep.mubr.msk.f32.mxu0 %vm123_vm0, %v72_v47  ;;  %561 = vmatprep.mubr.f32.mxu1 %v5563_v0 }
  0x67   :  { %3780 = vmatmul.mubr.msk.f32.gmra.mrb[18].mxu0 %vm123_vm0, %v73_v48  ;;  %3505 = vmatmul.mubr.msk.f32.gmra.mrb[18].mxu1 %vm123_vm0, %v75_v50 }
  0x68   :  { %3782 = vmatprep.mubr.msk.f32.mxu0 %vm123_vm0, %v74_v49  ;;  %567 = vmatprep.mubr.f32.mxu1 %v5563_v0 }
  0x6b   :  { %3783 = vmatmul.mubr.msk.f32.gmra.mrb[20].mxu0 %vm123_vm0, %v75_v50  ;;  %3506 = vmatmul.mubr.msk.f32.gmra.mrb[20].mxu1 %vm123_vm0, %v76_v51 }
  0x6c   :  { %3785 = vmatprep.mubr.msk.f32.mxu0 %vm123_vm0, %v76_v51  ;;  %573 = vmatprep.mubr.f32.mxu1 %v5563_v0 }
  0x6f   :  { %3786 = vmatmul.mubr.msk.f32.gmra.mrb[22].mxu0 %vm123_vm0, %v77_v52  ;;  %3507 = vmatmul.mubr.msk.f32.gmra.mrb[22].mxu1 %vm123_vm0, %v77_v52 }
  0x70   :  { %3788 = vmatprep.mubr.msk.f32.mxu0 %vm123_vm0, %v78_v53  ;;  %579 = vmatprep.mubr.f32.mxu1 %v5563_v0 }
  0x73   :  { %3789 = vmatmul.mubr.msk.f32.gmra.mrb[24].mxu0 %vm123_vm0, %v79_v54  ;;  %3508 = vmatmul.mubr.msk.f32.gmra.mrb[24].mxu1 %vm123_vm0, %v78_v53  ;;  %v118_v53 = vsub.s32 2, %v4705_v7 }
  0x74   :  { %3791 = vmatprep.mubr.msk.f32.mxu0 %vm123_vm0, %v80_v55  ;;  %585 = vmatprep.mubr.f32.mxu1 %v5563_v0 }
  0x77   :  { %3792 = vmatmul.mubr.msk.f32.gmra.mrb[26].mxu0 %vm123_vm0, %v81_v56  ;;  %3509 = vmatmul.mubr.msk.f32.gmra.mrb[26].mxu1 %vm123_vm0, %v79_v54 }
  0x78   :  { %3794 = vmatprep.mubr.msk.f32.mxu0 %vm123_vm0, %v82_v57  ;;  %591 = vmatprep.mubr.f32.mxu1 %v5563_v0 }
  0x7b   :  { %3795 = vmatmul.mubr.msk.f32.gmra.mrb[28].mxu0 %vm123_vm0, %v83_v58  ;;  %3510 = vmatmul.mubr.msk.f32.gmra.mrb[28].mxu1 %vm123_vm0, %v80_v55 }
  0x7c   :  { %3797 = vmatprep.mubr.msk.f32.mxu0 %vm123_vm0, %v84_v59  ;;  %597 = vmatprep.mubr.f32.mxu1 %v5563_v0 }
  0x7f   :  { %3798 = vmatmul.mubr.msk.f32.gmra.mrb[30].mxu0 %vm123_vm0, %v85_v60  ;;  %3511 = vmatmul.mubr.msk.f32.gmra.mrb[30].mxu1 %vm123_vm0, %v81_v56 }
  0x80   :  { %3800 = vmatprep.mubr.msk.f32.mxu0 %vm123_vm0, %v86_v61  ;;  %603 = vmatprep.mubr.f32.mxu1 %v5563_v0 }
  0x83   :  { %3801 = vmatmul.mubr.msk.f32.gmra.mrb[32].mxu0 %vm123_vm0, %v87_v62  ;;  %3512 = vmatmul.mubr.msk.f32.gmra.mrb[32].mxu1 %vm123_vm0, %v82_v57 }
  0x84   :  { %3803 = vmatprep.mubr.msk.f32.mxu0 %vm123_vm0, %v88_v63  ;;  %609 = vmatprep.mubr.f32.mxu1 %v5563_v0 }
  0x87   :  { %3804 = vmatmul.mubr.msk.f32.gmra.mrb[34].mxu0 %vm123_vm0, %v89_v1  ;;  %3513 = vmatmul.mubr.msk.f32.gmra.mrb[34].mxu1 %vm123_vm0, %v83_v58 }
  0x88   :  { %3806 = vmatprep.mubr.msk.f32.mxu0 %vm123_vm0, %v90_v2  ;;  %615 = vmatprep.mubr.f32.mxu1 %v5563_v0 }
  0x8b   :  { %3807 = vmatmul.mubr.msk.f32.gmra.mrb[36].mxu0 %vm123_vm0, %v91_v3  ;;  %3514 = vmatmul.mubr.msk.f32.gmra.mrb[36].mxu1 %vm123_vm0, %v84_v59 }
  0x8c   :  { %3809 = vmatprep.mubr.msk.f32.mxu0 %vm123_vm0, %v92_v4  ;;  %621 = vmatprep.mubr.f32.mxu1 %v5563_v0 }
  0x8f   :  { %3810 = vmatmul.mubr.msk.f32.gmra.mrb[38].mxu0 %vm123_vm0, %v93_v5  ;;  %3515 = vmatmul.mubr.msk.f32.gmra.mrb[38].mxu1 %vm123_vm0, %v85_v60 }
  0x90   :  { %627 = vmatprep.mubr.f32.mxu1 %v5563_v0 }
  0x93   :  { %3516 = vmatmul.mubr.msk.f32.gmra.mrb[40].mxu1 %vm123_vm0, %v86_v61 }
  0x94   :  { %633 = vmatprep.mubr.f32.mxu1 %v5563_v0 }
  0x97   :  { %3517 = vmatmul.mubr.msk.f32.gmra.mrb[42].mxu1 %vm123_vm0, %v87_v62  ;;  %v4786_v62 = vrot.slane %v106_v9, %v118_v53 }
  0x98   :  { %639 = vmatprep.mubr.f32.mxu1 %v5563_v0 }
  0x9b   :  { %3518 = vmatmul.mubr.msk.f32.gmra.mrb[44].mxu1 %vm123_vm0, %v88_v63 }
  0x9c   :  { %645 = vmatprep.mubr.f32.mxu1 %v5563_v0 }
  0x9f   :  { %3519 = vmatmul.mubr.msk.f32.gmra.mrb[46].mxu1 %vm123_vm0, %v89_v1 }
  0xa0   :  { %651 = vmatprep.mubr.f32.mxu1 %v5563_v0 }
  0xa3   :  { %3520 = vmatmul.mubr.msk.f32.gmra.mrb[48].mxu1 %vm123_vm0, %v90_v2 }
  0xa4   :  { %657 = vmatprep.mubr.f32.mxu1 %v5563_v0 }
  0xa7   :  { %3521 = vmatmul.mubr.msk.f32.gmra.mrb[50].mxu1 %vm123_vm0, %v91_v3 }
  0xa8   :  { %663 = vmatprep.mubr.f32.mxu1 %v5563_v0 }
  0xab   :  { %3522 = vmatmul.mubr.msk.f32.gmra.mrb[52].mxu1 %vm123_vm0, %v92_v4  ;;  %v4793_v4 = vrot.slane %v4737_v28, %v118_v53 }
  0xac   :  { %669 = vmatprep.mubr.f32.mxu1 %v5563_v0 }
  0xaf   :  { %3523 = vmatmul.mubr.msk.f32.gmra.mrb[54].mxu1 %vm123_vm0, %v93_v5 }
 0x116   :  { %v214_v11 = vpop.f32.mrb[0].mxu0  ;;  %v4715_v13 = vpop.f32.mrb[0].mxu1 }
 0x117   :  { %v216_v12 = vpop.f32.mrb[1].mxu0  ;;  %v327_v15 = vpop.f32.mrb[1].mxu1  ;;  %v4751_v40 = vadd.f32 %v214_v11, %v111_v21 }
 0x118   :  { %v217_v14 = vadd.f32 %v216_v12, %v4713_v10 }
 0x11a   :  { %v220_v17 = vpop.f32.mrb[2].mxu0  ;;  %3820 = vmatprep.mubr.f32.mxu0 %v217_v14  ;;  %v4721_v19 = vpop.f32.mrb[2].mxu1 }
 0x11b   :  { %v4719_v18 = vpop.f32.mrb[3].mxu0  ;;  %v4723_v20 = vpop.f32.mrb[3].mxu1  ;;  %v4790_v3 = vadd.f32 %v220_v17, %v111_v21  ;;  %v328_v17 = vadd.f32 %v327_v15, %v4786_v62 }
 0x11e   :  { %v226_v22 = vpop.f32.mrb[4].mxu0  ;;  %v4727_v25 = vpop.f32.mrb[4].mxu1 }
 0x11f   :  { %v4725_v23 = vadd.f32 %v226_v22, %v111_v21  ;;  %v228_v24 = vpop.f32.mrb[5].mxu0  ;;  %v4732_v27 = vpop.f32.mrb[5].mxu1 }
 0x120   :  { %v4730_v26 = vadd.f32 %v228_v24, %v4713_v10 }
 0x122   :  { %v232_v29 = vpop.f32.mrb[6].mxu0  ;;  %v4741_v32 = vpop.f32.mrb[6].mxu1 }
 0x123   :  { %v4739_v30 = vadd.f32 %v232_v29, %v111_v21  ;;  %v234_v31 = vpop.f32.mrb[7].mxu0  ;;  %v4747_v35 = vpop.f32.mrb[7].mxu1 }
 0x124   :  { %v235_v34 = vadd.f32 %v234_v31, %v4713_v10 }
 0x126   :  { %v238_v36 = vpop.f32.mrb[8].mxu0  ;;  %3862 = vmatprep.mubr.f32.mxu1 %v235_v34  ;;  %v533_v38 = vpop.f32.mrb[8].mxu1 }
 0x127   :  { %v4749_v37 = vadd.f32 %v238_v36, %v111_v21  ;;  %v240_v39 = vpop.f32.mrb[9].mxu0  ;;  %v4754_v41 = vadd.f32 %v533_v38, %v4744_v33  ;;  %v4759_v43 = vpop.f32.mrb[9].mxu1  ;;  %v333_v36 = vadd.f32 %v4715_v13, %v4786_v62 }
 0x128   :  { %v4757_v42 = vadd.f32 %v240_v39, %v4713_v10 }
 0x129   :  { %5582 = vst [vmem:[#allocation13_spill] sm:$0xff] %v4749_v37 }
 0x12a   :  { %v244_v45 = vpop.f32.mrb[10].mxu0  ;;  %v539_v48 = vpop.f32.mrb[10].mxu1 }
 0x12b   :  { %v4763_v46 = vadd.f32 %v244_v45, %v111_v21  ;;  %v246_v47 = vpop.f32.mrb[11].mxu0  ;;  %v4768_v50 = vpop.f32.mrb[11].mxu1  ;;  %v4771_v52 = vadd.f32 %v539_v48, %v4744_v33 }
 0x12c   :  { %v4766_v49 = vadd.f32 %v246_v47, %v4713_v10 }
 0x12d   :  { %5583 = vst [vmem:[#allocation14_spill] sm:$0xff] %v4763_v46 }
 0x12e   :  { %v250_v51 = vpop.f32.mrb[12].mxu0  ;;  %v545_v56 = vpop.f32.mrb[12].mxu1 }
 0x12f   :  { %v4774_v54 = vadd.f32 %v250_v51, %v111_v21  ;;  %v252_v55 = vpop.f32.mrb[13].mxu0  ;;  %v4780_v58 = vadd.f32 %v545_v56, %v4744_v33  ;;  %v4782_v59 = vpop.f32.mrb[13].mxu1 }
 0x130   :  { %v4777_v57 = vadd.f32 %v252_v55, %v4713_v10 }
 0x131   :  { %5584 = vst [vmem:[#allocation15_spill] sm:$0xff] %v4774_v54 }
 0x132   :  { %v256_v61 = vpop.f32.mrb[14].mxu0  ;;  %v551_v1 = vpop.f32.mrb[14].mxu1 }
 0x133   :  { %v4788_v63 = vadd.f32 %v256_v61, %v111_v21  ;;  %v258_v2 = vpop.f32.mrb[15].mxu0  ;;  %v4796_v5 = vadd.f32 %v551_v1, %v4744_v33  ;;  %v4801_v12 = vpop.f32.mrb[15].mxu1 }
 0x134   :  { %v4799_v11 = vadd.f32 %v258_v2, %v4713_v10 }
 0x135   :  { %5585 = vst [vmem:[#allocation16_spill] sm:$0xff] %v4788_v63 }
 0x136   :  { %v3778_v14 = vpop.f32.mrb[16].mxu0  ;;  %v557_v22 = vpop.f32.mrb[16].mxu1 }
 0x137   :  { %v742_v16 = vpop.f32.mrb[17].mxu0  ;;  %v4807_v24 = vpop.f32.mrb[17].mxu1  ;;  %v4810_v31 = vadd.f32 %v557_v22, %v4744_v33  ;;  %v748_v47 = vadd.f32 %v3778_v14, %v4793_v4 }
 0x138   :  { %v743_v21 = vadd.f32 %v742_v16, %v4793_v4 }
 0x13a   :  { %v4132_v29 = vpack.c.bf16 %v743_v21, %v328_v17  ;;  %v3781_v34 = vpop.f32.mrb[18].mxu0  ;;  %v563_v45 = vpop.f32.mrb[18].mxu1 }
 0x13b   :  { %v758_v38 = vadd.f32 %v3781_v34, %v4793_v4  ;;  %v752_v39 = vpop.f32.mrb[19].mxu0  ;;  %v4818_v48 = vadd.f32 %v563_v45, %v4744_v33  ;;  %v4820_v51 = vpop.f32.mrb[19].mxu1 }
 0x13c   :  { %v753_v15 = vadd.f32 %v752_v39, %v4793_v4  ;;  %4133 = vmatprep.subr.bf16.mxu0 %v4132_v29 }
 0x13d   :  { %v4140_v53 = vpack.c.bf16 %v758_v38, %v333_v36  ;;  %4135 = vmatpush3.bf16.xpose.msra.mxu0 %v4132_v29  ;;  %v338_v38 = vadd.f32 %v4723_v20, %v4786_v62  ;;  %v343_v20 = vadd.f32 %v4721_v19, %v4786_v62 }
 0x13e   :  { %v4136_v55 = vpack.c.bf16 %v753_v15, %v748_v47  ;;  %v3784_v56 = vpop.f32.mrb[20].mxu0  ;;  %v569_v61 = vpop.f32.mrb[20].mxu1  ;;  %v4843_v47 = vrot.slane %v4737_v28, %v114_v8 }
 0x13f   :  { %v768_v1 = vadd.f32 %v3784_v56, %v4793_v4  ;;  %v762_v2 = vpop.f32.mrb[21].mxu0  ;;  %v4826_v14 = vadd.f32 %v569_v61, %v4744_v33  ;;  %v4829_v22 = vpop.f32.mrb[21].mxu1 }
 0x140   :  { %v763_v16 = vadd.f32 %v762_v2, %v4793_v4  ;;  %4137 = vmatprep.subr.bf16.mxu0 %v4136_v55 }
 0x142   :  { %v4833_v21 = vpack.c.bf16 %v768_v1, %v763_v16  ;;  %v3787_v29 = vpop.f32.mrb[22].mxu0  ;;  %v575_v36 = vpop.f32.mrb[22].mxu1 }
 0x143   :  { %v772_v34 = vpop.f32.mrb[23].mxu0  ;;  %v4838_v45 = vpop.f32.mrb[23].mxu1  ;;  %v778_v15 = vadd.f32 %v3787_v29, %v4793_v4  ;;  %v4849_v61 = vadd.f32 %v575_v36, %v4744_v33  ;;  %v536_v36 = vadd.f32 %v4759_v43, %v4843_v47 }
 0x144   :  { %v773_v39 = vadd.f32 %v772_v34, %v4793_v4 }
 0x145   :  { %4139 = vmatpush3.bf16.xpose.msra.mxu0 %v4136_v55 }
 0x146   :  { %v4846_v56 = vpack.c.bf16 %v773_v39, %v338_v38  ;;  %v3790_v1 = vpop.f32.mrb[24].mxu0  ;;  %4141 = vmatprep.subr.bf16.mxu0 %v4140_v53  ;;  %v581_v16 = vpop.f32.mrb[24].mxu1 }
 0x147   :  { %v788_v2 = vadd.f32 %v3790_v1, %v4793_v4  ;;  %v782_v55 = vpop.f32.mrb[25].mxu0  ;;  %v4856_v8 = vadd.f32 %v581_v16, %v4744_v33  ;;  %v4858_v28 = vpop.f32.mrb[25].mxu1  ;;  %v542_v1 = vadd.f32 %v4768_v50, %v4843_v47 }
 0x148   :  { %v783_v34 = vadd.f32 %v782_v55, %v4793_v4 }
 0x149   :  { %v4156_v29 = vpack.c.bf16 %v788_v2, %v343_v20  ;;  %v548_v20 = vadd.f32 %v4782_v59, %v4843_v47 }
 0x14a   :  { %v4862_v38 = vpack.c.bf16 %v783_v34, %v778_v15  ;;  %v3793_v39 = vpop.f32.mrb[26].mxu0  ;;  %v587_v17 = vpop.f32.mrb[26].mxu1 }
 0x14b   :  { %4157 = vmatprep.subr.bf16.mxu1 %v4156_v29  ;;  %v798_v55 = vadd.f32 %v3793_v39, %v4793_v4  ;;  %v792_v16 = vpop.f32.mrb[27].mxu0  ;;  %v4870_v13 = vadd.f32 %v587_v17, %v4744_v33  ;;  %v589_v15 = vpop.f32.mrb[27].mxu1  ;;  %v223_v17 = vadd.f32 %v4719_v18, %v4713_v10  ;;  %v348_v39 = vadd.f32 %v4732_v27, %v4786_v62 }
 0x14c   :  { %3821 = vmatmul.mubr.f32.vlgmr.msra.gmra.mrb[40].mxu0 %v536_v36  ;;  %4159 = vmatpush3.bf16.xpose.msra.mxu1 %v4156_v29  ;;  %v793_v43 = vadd.f32 %v792_v16, %v4793_v4  ;;  %v353_v10 = vadd.f32 %v4727_v25, %v4786_v62 }
 0x14d   :  { %4143 = vmatpush3.bf16.xpose.msra.mxu0 %v4140_v53  ;;  %3823 = vmatprep.mubr.f32.mxu0 %v542_v1 }
 0x14e   :  { %v4160_v2 = vpack.c.bf16 %v798_v55, %v793_v43  ;;  %4145 = vmatprep.subr.bf16.mxu0 %v4833_v21  ;;  %v3796_v34 = vpop.f32.mrb[28].mxu0  ;;  %v593_v36 = vpop.f32.mrb[28].mxu1 }
 0x14f   :  { %v802_v29 = vpop.f32.mrb[29].mxu0  ;;  %v595_v53 = vpop.f32.mrb[29].mxu1  ;;  %v4884_v1 = vadd.f32 %v593_v36, %v4744_v33  ;;  %v808_v55 = vadd.f32 %v3796_v34, %v4793_v4 }
 0x150   :  { %3824 = vmatmul.mubr.f32.gmra.mrb[42].mxu0 %v548_v20  ;;  %4161 = vmatprep.subr.bf16.mxu1 %v4160_v2  ;;  %v803_v59 = vadd.f32 %v802_v29, %v4793_v4 }
 0x151   :  { %3834 = vmatprep.mubr.f32.mxu0 %v223_v17 }
 0x152   :  { %v4887_v16 = vpack.c.bf16 %v803_v59, %v348_v39  ;;  %v3799_v43 = vpop.f32.mrb[30].mxu0  ;;  %v599_v18 = vpop.f32.mrb[30].mxu1 }
 0x153   :  { %v818_v27 = vadd.f32 %v3799_v43, %v4793_v4  ;;  %v812_v20 = vpop.f32.mrb[31].mxu0  ;;  %v4893_v50 = vadd.f32 %v599_v18, %v4744_v33  ;;  %v601_v17 = vpop.f32.mrb[31].mxu1 }
 0x154   :  { %4163 = vmatpush3.bf16.xpose.msra.mxu1 %v4160_v2  ;;  %v813_v36 = vadd.f32 %v812_v20, %v4793_v4 }
 0x155   :  { %4147 = vmatpush3.bf16.xpose.msra.mxu0 %v4833_v21  ;;  %v4172_v34 = vpack.c.bf16 %v818_v27, %v353_v10  ;;  %v590_v10 = vadd.f32 %v589_v15, %v4843_v47  ;;  %v554_v27 = vadd.f32 %v4801_v12, %v4843_v47  ;;  %v560_v15 = vadd.f32 %v4807_v24, %v4843_v47 }
 0x156   :  { %4149 = vmatprep.subr.bf16.mxu0 %v4846_v56  ;;  %v4900_v25 = vpack.c.bf16 %v813_v36, %v808_v55  ;;  %v3802_v39 = vpop.f32.mrb[32].mxu0  ;;  %v605_v59 = vpop.f32.mrb[32].mxu1 }
 0x157   :  { %4173 = vmatprep.subr.bf16.mxu1 %v4172_v34  ;;  %v828_v43 = vadd.f32 %v3802_v39, %v4793_v4  ;;  %v822_v18 = vpop.f32.mrb[33].mxu0  ;;  %v4904_v2 = vadd.f32 %v605_v59, %v4744_v33  ;;  %v4906_v20 = vpop.f32.mrb[33].mxu1  ;;  %v596_v39 = vadd.f32 %v595_v53, %v4843_v47  ;;  %v566_v53 = vadd.f32 %v4820_v51, %v4843_v47 }
 0x158   :  { %v823_v21 = vadd.f32 %v822_v18, %v4793_v4  ;;  %v358_v18 = vadd.f32 %v4747_v35, %v4786_v62 }
 0x159   :  { %5586 = vst [vmem:[#allocation17_spill] sm:$0xff] %v4904_v2 }
 0x15a   :  { %v4176_v36 = vpack.c.bf16 %v828_v43, %v823_v21  ;;  %v3805_v29 = vpop.f32.mrb[34].mxu0  ;;  %v611_v19 = vpop.f32.mrb[34].mxu1  ;;  %v602_v21 = vadd.f32 %v601_v17, %v4843_v47 }
 0x15b   :  { %3863 = vmatmul.mubr.f32.vlgmr.msra.gmra.mrb[56].mxu1 %v590_v10  ;;  %v838_v59 = vadd.f32 %v3805_v29, %v4793_v4  ;;  %v832_v9 = vpop.f32.mrb[35].mxu0  ;;  %v4920_v12 = vpop.f32.mrb[35].mxu1  ;;  %v4928_v29 = vadd.f32 %v611_v19, %v4744_v33 }
 0x15c   :  { %3835 = vmatmul.mubr.f32.vlgmr.msra.gmra.mrb[44].mxu0 %v554_v27  ;;  %4175 = vmatpush3.bf16.xpose.msra.mxu1 %v4172_v34  ;;  %v833_v43 = vadd.f32 %v832_v9, %v4793_v4  ;;  %v363_v9 = vadd.f32 %v4741_v32, %v4786_v62 }
 0x15d   :  { %4151 = vmatpush3.bf16.xpose.msra.mxu0 %v4846_v56  ;;  %3865 = vmatprep.mubr.f32.mxu1 %v596_v39  ;;  %5587 = vst [vmem:[#allocation18_spill] sm:$0xff] %v4928_v29 }
 0x15e   :  { %4153 = vmatprep.subr.bf16.mxu0 %v4862_v38  ;;  %3837 = vmatprep.mubr.f32.mxu0 %v560_v15  ;;  %v4931_v35 = vpack.c.bf16 %v833_v43, %v358_v18  ;;  %v3808_v24 = vpop.f32.mrb[36].mxu0  ;;  %v617_v17 = vpop.f32.mrb[36].mxu1 }
 0x15f   :  { %3866 = vmatmul.mubr.f32.gmra.mrb[58].mxu1 %v602_v21  ;;  %4177 = vmatprep.subr.bf16.mxu1 %v4176_v36  ;;  %v848_v56 = vadd.f32 %v3808_v24, %v4793_v4  ;;  %v842_v34 = vpop.f32.mrb[37].mxu0  ;;  %v4937_v51 = vadd.f32 %v617_v17, %v4744_v33  ;;  %v4940_v19 = vpop.f32.mrb[37].mxu1 }
 0x160   :  { %3838 = vmatmul.mubr.f32.gmra.mrb[46].mxu0 %v566_v53  ;;  %3890 = vmatprep.mubr.f32.mxu1 %v4766_v49  ;;  %v843_v10 = vadd.f32 %v842_v34, %v4793_v4 }
 0x161   :  { %5588 = vst [vmem:[#allocation19_spill] sm:$0xff] %v4937_v51  ;;  %3848 = vmatprep.mubr.f32.mxu0 %v4730_v26  ;;  %v4188_v27 = vpack.c.bf16 %v848_v56, %v363_v9 }
 0x162   :  { %v4946_v62 = vpack.c.bf16 %v843_v10, %v838_v59  ;;  %v3811_v39 = vpop.f32.mrb[38].mxu0  ;;  %v623_v18 = vpop.f32.mrb[38].mxu1 }
 0x163   :  { %v858_v15 = vadd.f32 %v3811_v39, %v4793_v4  ;;  %v852_v43 = vpop.f32.mrb[39].mxu0  ;;  %v4950_v21 = vadd.f32 %v623_v18, %v4744_v33  ;;  %v625_v49 = vpop.f32.mrb[39].mxu1 }
 0x164   :  { %4179 = vmatpush3.bf16.xpose.msra.mxu1 %v4176_v36  ;;  %v853_v53 = vadd.f32 %v852_v43, %v4793_v4  ;;  %v626_v24 = vadd.f32 %v625_v49, %v4843_v47  ;;  %v572_v36 = vadd.f32 %v4829_v22, %v4843_v47  ;;  %v584_v22 = vadd.f32 %v4858_v28, %v4843_v47 }
 0x165   :  { %4155 = vmatpush3.bf16.xpose.msra.mxu0 %v4862_v38  ;;  %4189 = vmatprep.subr.bf16.mxu1 %v4188_v27  ;;  %v578_v38 = vadd.f32 %v4838_v45, %v4843_v47 }
 0x166   :  { %4165 = vmatprep.subr.bf16.mxu0 %v4887_v16  ;;  %v4192_v59 = vpack.c.bf16 %v858_v15, %v853_v53  ;;  %v629_v9 = vpop.f32.mrb[40].mxu1 }
 0x167   :  { %v631_v17 = vpop.f32.mrb[41].mxu1  ;;  %v4962_v4 = vadd.f32 %v629_v9, %v4744_v33 }
 0x168   :  { %v632_v56 = vadd.f32 %v631_v17, %v4843_v47 }
 0x169   :  { %5589 = vst [vmem:[#allocation20_spill] sm:$0xff] %v4962_v4 }
 0x16a   :  { %v635_v34 = vpop.f32.mrb[42].mxu1 }
 0x16b   :  { %3891 = vmatmul.mubr.f32.vlgmr.msra.gmra.mrb[60].mxu1 %v626_v24  ;;  %v4967_v10 = vadd.f32 %v635_v34, %v4744_v33  ;;  %v637_v39 = vpop.f32.mrb[43].mxu1 }
 0x16c   :  { %3849 = vmatmul.mubr.f32.vlgmr.msra.gmra.mrb[48].mxu0 %v572_v36  ;;  %3893 = vmatprep.mubr.f32.mxu1 %v632_v56  ;;  %v638_v18 = vadd.f32 %v637_v39, %v4843_v47 }
 0x16d   :  { %5590 = vst [vmem:[#allocation21_spill] sm:$0xff] %v4967_v10  ;;  %4167 = vmatpush3.bf16.xpose.msra.mxu0 %v4887_v16  ;;  %3851 = vmatprep.mubr.f32.mxu0 %v578_v38 }
 0x16e   :  { %4191 = vmatpush3.bf16.xpose.msra.mxu1 %v4188_v27  ;;  %4169 = vmatprep.subr.bf16.mxu0 %v4900_v25  ;;  %v641_v45 = vpop.f32.mrb[44].mxu1 }
 0x16f   :  { %3894 = vmatmul.mubr.f32.gmra.mrb[62].mxu1 %v638_v18  ;;  %4193 = vmatprep.subr.bf16.mxu1 %v4192_v59  ;;  %v4977_v43 = vadd.f32 %v641_v45, %v4744_v33  ;;  %v643_v16 = vpop.f32.mrb[45].mxu1 }
 0x170   :  { %3852 = vmatmul.mubr.f32.gmra.mrb[50].mxu0 %v584_v22  ;;  %3918 = vmatprep.mubr.f32.mxu1 %v4799_v11 }
 0x171   :  { %5591 = vst [vmem:[#allocation22_spill] sm:$0xff] %v4977_v43  ;;  %3876 = vmatprep.mubr.f32.mxu0 %v4757_v42  ;;  %v608_v42 = vadd.f32 %v4906_v20, %v4843_v47  ;;  %v620_v20 = vadd.f32 %v4940_v19, %v4843_v47 }
 0x172   :  { %v647_v49 = vpop.f32.mrb[46].mxu1 }
 0x173   :  { %v649_v53 = vpop.f32.mrb[47].mxu1  ;;  %v4985_v27 = vadd.f32 %v647_v49, %v4744_v33 }
 0x175   :  { %4171 = vmatpush3.bf16.xpose.msra.mxu0 %v4900_v25  ;;  %5592 = vst [vmem:[#allocation23_spill] sm:$0xff] %v4985_v27  ;;  %v614_v25 = vadd.f32 %v4920_v12, %v4843_v47 }
 0x176   :  { %4195 = vmatpush3.bf16.xpose.msra.mxu1 %v4192_v59  ;;  %4181 = vmatprep.subr.bf16.mxu0 %v4931_v35  ;;  %v653_v24 = vpop.f32.mrb[48].mxu1 }
 0x177   :  { %v4989_v9 = vadd.f32 %v653_v24, %v4744_v33  ;;  %v655_v11 = vpop.f32.mrb[49].mxu1 }
 0x179   :  { %5593 = vst [vmem:[#allocation24_spill] sm:$0xff] %v4989_v9 }
 0x17a   :  { %v659_v56 = vpop.f32.mrb[50].mxu1 }
 0x17b   :  { %v4998_v36 = vadd.f32 %v659_v56, %v4744_v33  ;;  %v661_v59 = vpop.f32.mrb[51].mxu1 }
 0x17c   :  { %3877 = vmatmul.mubr.f32.vlgmr.msra.gmra.mrb[52].mxu0 %v608_v42  ;;  %v662_v38 = vadd.f32 %v661_v59, %v4843_v47  ;;  %v650_v42 = vadd.f32 %v649_v53, %v4843_v47 }
 0x17d   :  { %5594 = vst [vmem:[#allocation25_spill] sm:$0xff] %v4998_v36  ;;  %4183 = vmatpush3.bf16.xpose.msra.mxu0 %v4931_v35  ;;  %3879 = vmatprep.mubr.f32.mxu0 %v614_v25  ;;  %v656_v25 = vadd.f32 %v655_v11, %v4843_v47 }
 0x17e   :  { %4185 = vmatprep.subr.bf16.mxu0 %v4946_v62  ;;  %3919 = vmatmul.mubr.f32.vlgmr.msra.gmra.mrb[64].mxu1 %v662_v38  ;;  %v665_v12 = vpop.f32.mrb[52].mxu1 }
 0x17f   :  { %v667_v39 = vpop.f32.mrb[53].mxu1  ;;  %v5010_v22 = vadd.f32 %v665_v12, %v4744_v33 }
 0x180   :  { %3880 = vmatmul.mubr.f32.gmra.mrb[54].mxu0 %v620_v20  ;;  %v668_v18 = vadd.f32 %v667_v39, %v4843_v47 }
 0x181   :  { %3904 = vmatprep.mubr.f32.mxu0 %v4777_v57  ;;  %5595 = vst [vmem:[#allocation26_spill] sm:$0xff] %v5010_v22  ;;  %v644_v57 = vadd.f32 %v643_v16, %v4843_v47 }
 0x182   :  { %v671_v35 = vpop.f32.mrb[54].mxu1  ;;  %3921 = vmatprep.mubr.f32.mxu1 %v668_v18 }
 0x183   :  { %v5013_v19 = vadd.f32 %v671_v35, %v4744_v33  ;;  %v673_v45 = vpop.f32.mrb[55].mxu1 }
 0x184   :  { %v674_v49 = vadd.f32 %v673_v45, %v4843_v47 }
 0x185   :  { %5596 = vst [vmem:[#allocation27_spill] sm:$0xff] %v5013_v19  ;;  %4187 = vmatpush3.bf16.xpose.msra.mxu0 %v4946_v62 }
 0x186   :  { %3922 = vmatmul.mubr.f32.gmra.mrb[66].mxu1 %v674_v49 }
 0x18c   :  { %3905 = vmatmul.mubr.f32.vlgmr.msra.gmra.mrb[56].mxu0 %v644_v57 }
 0x18d   :  { %3907 = vmatprep.mubr.f32.mxu0 %v650_v42 }
 0x190   :  { %3908 = vmatmul.mubr.f32.gmra.mrb[58].mxu0 %v656_v25 }
 0x21f   :  { %v5022_v33 = vpop.f32.mrb[40].mxu0 }
 0x220   :  { %v1736_v62 = vsel %vm123_vm0, %v5022_v33, -inf  ;;  %v5026_v56 = vpop.f32.mrb[41].mxu0 }
 0x221   :  { %1737 = vmax.xlane.f32.xlu0 %v1736_v62  ;;  %v1733_v16 = vsel %vm123_vm0, %v5026_v56, -inf }
 0x223   :  { %v5028_v59 = vpop.f32.mrb[42].mxu0 }
 0x224   :  { %v1742_v53 = vsel %vm123_vm0, %v5028_v59, -inf  ;;  %v5034_v38 = vpop.f32.mrb[43].mxu0 }
 0x225   :  { %1734 = vmax.xlane.f32.xlu0 %v1733_v16  ;;  %1743 = vmax.xlane.f32.xlu1 %v1742_v53  ;;  %v1739_v47 = vsel %vm123_vm0, %v5034_v38, -inf }
 0x229   :  { %1740 = vmax.xlane.f32.xlu1 %v1739_v47 }
 0x22e   :  { %v5038_v11 = vpop.f32.mrb[56].mxu1 }
 0x22f   :  { %v5040_v20 = vpop.f32.mrb[57].mxu1  ;;  %v1772_v12 = vsel %vm123_vm0, %v5038_v11, -inf  ;;  %v5044_v39 = vpop.f32.mrb[44].mxu0 }
 0x230   :  { %1773 = vmax.xlane.f32.xlu0 %v1772_v12  ;;  %v1769_v18 = vsel %vm123_vm0, %v5040_v20, -inf  ;;  %v5048_v35 = vpop.f32.mrb[45].mxu0  ;;  %v1748_v49 = vsel %vm123_vm0, %v5044_v39, -inf }
 0x231   :  { %1770 = vmax.xlane.f32.xlu1 %v1769_v18  ;;  %v1745_v25 = vsel %vm123_vm0, %v5048_v35, -inf }
 0x232   :  { %v5050_v45 = vpop.f32.mrb[58].mxu1 }
 0x233   :  { %v5054_v57 = vpop.f32.mrb[59].mxu1  ;;  %v5056_v42 = vpop.f32.mrb[46].mxu0  ;;  %v1778_v53 = vsel %vm123_vm0, %v5050_v45, -inf }
 0x234   :  { %1749 = vmax.xlane.f32.xlu0 %v1748_v49  ;;  %v5060_v62 = vpop.f32.mrb[47].mxu0  ;;  %v1775_v16 = vsel %vm123_vm0, %v5054_v57, -inf  ;;  %v1754_v12 = vsel %vm123_vm0, %v5056_v42, -inf }
 0x235   :  { %1746 = vmax.xlane.f32.xlu1 %v1745_v25  ;;  %v1751_v47 = vsel %vm123_vm0, %v5060_v62, -inf }
 0x238   :  { %1776 = vmax.xlane.f32.xlu0 %v1775_v16 }
 0x239   :  { %1779 = vmax.xlane.f32.xlu1 %v1778_v53 }
 0x23c   :  { %1752 = vmax.xlane.f32.xlu0 %v1751_v47 }
 0x23d   :  { %1755 = vmax.xlane.f32.xlu1 %v1754_v12 }
 0x23e   :  { %v5070_v18 = vpop.f32.mrb[60].mxu1 }
 0x23f   :  { %v5072_v49 = vpop.f32.mrb[48].mxu0  ;;  %v1796_v25 = vsel %vm123_vm0, %v5070_v18, -inf  ;;  %v5076_v16 = vpop.f32.mrb[61].mxu1 }
 0x240   :  { %1797 = vmax.xlane.f32.xlu0 %v1796_v25  ;;  %v1760_v53 = vsel %vm123_vm0, %v5072_v49, -inf  ;;  %v5080_v17 = vpop.f32.mrb[49].mxu0  ;;  %v1793_v32 = vsel %vm123_vm0, %v5076_v16, -inf }
 0x241   :  { %1761 = vmax.xlane.f32.xlu1 %v1760_v53  ;;  %v1757_v12 = vsel %vm123_vm0, %v5080_v17, -inf  ;;  %v5565_v53 = vmov 0.0|0.0  }
 0x242   :  { %v5082_v47 = vpop.f32.mrb[62].mxu1  ;;  %4196 = vmatprep.subr.bf16.mxu0 %v5565_v53  ;;  %4202 = vmatprep.subr.bf16.mxu1 %v5565_v53 }
 0x243   :  { %v5086_v28 = vpop.f32.mrb[63].mxu1  ;;  %v5088_v24 = vpop.f32.mrb[50].mxu0  ;;  %v1802_v55 = vsel %vm123_vm0, %v5082_v47, -inf }
 0x244   :  { %1758 = vmax.xlane.f32.xlu0 %v1757_v12  ;;  %v5092_v25 = vpop.f32.mrb[51].mxu0  ;;  %v1799_v34 = vsel %vm123_vm0, %v5086_v28, -inf }
 0x245   :  { %1794 = vmax.xlane.f32.xlu1 %v1793_v32  ;;  %v1763_v12 = vsel %vm123_vm0, %v5092_v25, -inf  ;;  %v1766_v32 = vsel %vm123_vm0, %v5088_v24, -inf }
 0x248   :  { %1800 = vmax.xlane.f32.xlu0 %v1799_v34 }
 0x249   :  { %1803 = vmax.xlane.f32.xlu1 %v1802_v55 }
 0x24c   :  { %1764 = vmax.xlane.f32.xlu0 %v1763_v12 }
 0x24d   :  { %1767 = vmax.xlane.f32.xlu1 %v1766_v32 }
 0x24f   :  { %v5104_v15 = vpop.f32.mrb[52].mxu0 }
 0x250   :  { %v5106_v26 = vpop.f32.mrb[53].mxu0  ;;  %v1784_v60 = vsel %vm123_vm0, %v5104_v15, -inf }
 0x251   :  { %1785 = vmax.xlane.f32.xlu1 %v1784_v60  ;;  %v1781_v34 = vsel %vm123_vm0, %v5106_v26, -inf  ;;  %v5112_v55 = vpop.f32.mrb[64].mxu1 }
 0x252   :  { %1782 = vmax.xlane.f32.xlu0 %v1781_v34  ;;  %v5114_v44 = vpop.f32.mrb[65].mxu1  ;;  %v1820_v12 = vsel %vm123_vm0, %v5112_v55, -inf }
 0x253   :  { %v5118_v32 = vpop.f32.mrb[54].mxu0  ;;  %v1817_v6 = vsel %vm123_vm0, %v5114_v44, -inf }
 0x254   :  { %v5122_v0 = vpop.f32.mrb[55].mxu0  ;;  %v1790_v60 = vsel %vm123_vm0, %v5118_v32, -inf }
 0x255   :  { %1818 = vmax.xlane.f32.xlu1 %v1817_v6  ;;  %v1787_v34 = vsel %vm123_vm0, %v5122_v0, -inf }
 0x256   :  { %1821 = vmax.xlane.f32.xlu0 %v1820_v12 }
 0x259   :  { %1791 = vmax.xlane.f32.xlu1 %v1790_v60  ;;  %v5128_v53 = vpop.f32.mrb[66].mxu1 }
 0x25a   :  { %1788 = vmax.xlane.f32.xlu0 %v1787_v34  ;;  %v5130_v27 = vpop.f32.mrb[67].mxu1  ;;  %v1826_v19 = vsel %vm123_vm0, %v5128_v53, -inf }
 0x25f   :  { %v5132_v9 = vpop.f32.mrb[56].mxu0 }
 0x260   :  { %v5134_v54 = vpop.f32.mrb[57].mxu0  ;;  %v1808_v6 = vsel %vm123_vm0, %v5132_v9, -inf }
 0x261   :  { %1809 = vmax.xlane.f32.xlu1 %v1808_v6  ;;  %v1805_v12 = vsel %vm123_vm0, %v5134_v54, -inf  ;;  %v1823_v6 = vsel %vm123_vm0, %v5130_v27, -inf }
 0x262   :  { %1806 = vmax.xlane.f32.xlu0 %v1805_v12 }
 0x263   :  { %v5140_v60 = vpop.f32.mrb[58].mxu0 }
 0x264   :  { %v5142_v43 = vpop.f32.mrb[59].mxu0  ;;  %v1814_v34 = vsel %vm123_vm0, %v5140_v60, -inf }
 0x265   :  { %1815 = vmax.xlane.f32.xlu1 %v1814_v34  ;;  %v1811_v22 = vsel %vm123_vm0, %v5142_v43, -inf }
 0x266   :  { %1812 = vmax.xlane.f32.xlu0 %v1811_v22 }
 0x269   :  { %1827 = vmax.xlane.f32.xlu1 %v1826_v19 }
 0x26a   :  { %1824 = vmax.xlane.f32.xlu0 %v1823_v6 }
 0x2ae   :  { %v1738_v12 = vpop.xlane.xlu0 %1737 }
 0x2af   :  { %v1830_v29 = vsub.f32 %v5022_v33, %v1738_v12 }
 0x2b1   :  { %v1863_v51 = vmul.f32 1.442695, %v1830_v29 }
 0x2b2   :  { %v1735_v63 = vpop.xlane.xlu0 %1734  ;;  %v1744_v36 = vpop.xlane.xlu1 %1743 }
 0x2b3   :  { %4303 = vpow2.f32 %v1863_v51  ;;  %v1829_v34 = vsub.f32 %v5026_v56, %v1735_v63  ;;  %v1832_v37 = vsub.f32 %v5028_v59, %v1744_v36 }
 0x2b5   :  { %v1861_v22 = vmul.f32 1.442695, %v1829_v34  ;;  %v1867_v2 = vmul.f32 1.442695, %v1832_v37 }
 0x2b6   :  { %v1741_v4 = vpop.xlane.xlu1 %1740 }
 0x2b7   :  { %4305 = vpow2.f32 %v1861_v22  ;;  %v1831_v19 = vsub.f32 %v5034_v38, %v1741_v4 }
 0x2b8   :  { %4307 = vpow2.f32 %v1867_v2 }
 0x2b9   :  { %v1865_v10 = vmul.f32 1.442695, %v1831_v19 }
 0x2bb   :  { %4309 = vpow2.f32 %v1865_v10 }
 0x2bd   :  { %v4304_v6 = vpop.eup %4303  ;;  %v1774_v46 = vpop.xlane.xlu0 %1773 }
 0x2be   :  { %v1842_v29 = vsub.f32 %v5038_v11, %v1774_v46  ;;  %v1771_v33 = vpop.xlane.xlu1 %1770  ;;  %v1928_v51 = vsel %vm123_vm0, %v4304_v6, 0.0 }
 0x2bf   :  { %v1841_v63 = vsub.f32 %v5040_v20, %v1771_v33  ;;  %1929 = vadd.xlane.f32.xlu1 %v1928_v51 }
 0x2c0   :  { %v1887_v36 = vmul.f32 1.442695, %v1842_v29  ;;  %v5597_v29 = vmov 0.0|0.0  }
 0x2c1   :  { %v4306_v56 = vpop.eup %4305  ;;  %v1885_v37 = vmul.f32 1.442695, %v1841_v63  ;;  %v1750_v59 = vpop.xlane.xlu0 %1749 }
 0x2c2   :  { %v4308_v12 = vpop.eup %4307  ;;  %4311 = vpow2.f32 %v1887_v36  ;;  %v1834_v2 = vsub.f32 %v5044_v39, %v1750_v59  ;;  %v1747_v4 = vpop.xlane.xlu1 %1746  ;;  %v1925_v10 = vsel %vm123_vm0, %v4306_v56, 0.0  ;;  %v4197_v38 = vpack.c.bf16 %v4304_v6, %v4306_v56 }
 0x2c3   :  { %4313 = vpow2.f32 %v1885_v37  ;;  %v1833_v46 = vsub.f32 %v5048_v35, %v1747_v4  ;;  %v1934_v11 = vsel %vm123_vm0, %v4308_v12, 0.0  ;;  %1926 = vadd.xlane.f32.xlu0 %v1925_v10 }
 0x2c4   :  { %v1871_v20 = vmul.f32 1.442695, %v1834_v2  ;;  %1935 = vadd.xlane.f32.xlu1 %v1934_v11  ;;  %4198 = vmatpush3.bf16.msra.mxu0 %v4197_v38 }
 0x2c5   :  { %v4310_v34 = vpop.eup %4309  ;;  %v1869_v22 = vmul.f32 1.442695, %v1833_v46  ;;  %v1777_v19 = vpop.xlane.xlu0 %1776  ;;  %4199 = vmatprep.subr.bf16.mxu0 %v5597_v29 }
 0x2c6   :  { %4315 = vpow2.f32 %v1871_v20  ;;  %v1843_v39 = vsub.f32 %v5054_v57, %v1777_v19  ;;  %v1780_v33 = vpop.xlane.xlu1 %1779  ;;  %v1931_v6 = vsel %vm123_vm0, %v4310_v34, 0.0  ;;  %v4200_v51 = vpack.c.bf16 %v4308_v12, %v4310_v34 }
 0x2c7   :  { %4317 = vpow2.f32 %v1869_v22  ;;  %v1844_v35 = vsub.f32 %v5050_v45, %v1780_v33  ;;  %1932 = vadd.xlane.f32.xlu0 %v1931_v6 }
 0x2c8   :  { %v1889_v63 = vmul.f32 1.442695, %v1843_v39  ;;  %4201 = vmatpush3.bf16.msra.mxu0 %v4200_v51 }
 0x2c9   :  { %v1891_v36 = vmul.f32 1.442695, %v1844_v35  ;;  %v1753_v56 = vpop.xlane.xlu0 %1752  ;;  %4208 = vmatprep.subr.bf16.mxu0 %v5597_v29 }
 0x2ca   :  { %4319 = vpow2.f32 %v1889_v63  ;;  %v1835_v37 = vsub.f32 %v5060_v62, %v1753_v56  ;;  %v1756_v59 = vpop.xlane.xlu1 %1755 }
 0x2cb   :  { %4321 = vpow2.f32 %v1891_v36  ;;  %v1836_v57 = vsub.f32 %v5056_v42, %v1756_v59 }
 0x2cc   :  { %v5170_v2 = vpop.eup %4311  ;;  %v1873_v12 = vmul.f32 1.442695, %v1835_v37 }
 0x2cd   :  { %v5172_v4 = vpop.eup %4313  ;;  %v1875_v45 = vmul.f32 1.442695, %v1836_v57  ;;  %v1798_v10 = vpop.xlane.xlu0 %1797  ;;  %v1964_v38 = vsel %vm123_vm0, %v5170_v2, 0.0 }
 0x2ce   :  { %4323 = vpow2.f32 %v1873_v12  ;;  %v1850_v46 = vsub.f32 %v5070_v18, %v1798_v10  ;;  %v1762_v11 = vpop.xlane.xlu1 %1761  ;;  %1965 = vadd.xlane.f32.xlu0 %v1964_v38  ;;  %v1961_v62 = vsel %vm123_vm0, %v5172_v4, 0.0 }
 0x2cf   :  { %4325 = vpow2.f32 %v1875_v45  ;;  %v1838_v20 = vsub.f32 %v5072_v49, %v1762_v11  ;;  %1962 = vadd.xlane.f32.xlu1 %v1961_v62 }
 0x2d0   :  { %v4316_v34 = vpop.eup %4315  ;;  %v1903_v22 = vmul.f32 1.442695, %v1850_v46 }
 0x2d1   :  { %v4318_v19 = vpop.eup %4317  ;;  %v1879_v39 = vmul.f32 1.442695, %v1838_v20  ;;  %v1759_v33 = vpop.xlane.xlu0 %1758  ;;  %v1940_v6 = vsel %vm123_vm0, %v4316_v34, 0.0 }
 0x2d2   :  { %4327 = vpow2.f32 %v1903_v22  ;;  %v1837_v18 = vsub.f32 %v5080_v17, %v1759_v33  ;;  %v1795_v51 = vpop.xlane.xlu1 %1794  ;;  %1941 = vadd.xlane.f32.xlu0 %v1940_v6  ;;  %v1937_v35 = vsel %vm123_vm0, %v4318_v19, 0.0  ;;  %v4203_v63 = vpack.c.bf16 %v4316_v34, %v4318_v19 }
 0x2d3   :  { %4329 = vpow2.f32 %v1879_v39  ;;  %v1849_v36 = vsub.f32 %v5076_v16, %v1795_v51  ;;  %1938 = vadd.xlane.f32.xlu1 %v1937_v35 }
 0x2d4   :  { %v5186_v49 = vpop.eup %4319  ;;  %v1877_v56 = vmul.f32 1.442695, %v1837_v18  ;;  %4204 = vmatpush3.bf16.msra.mxu1 %v4203_v63 }
 0x2d5   :  { %v5188_v37 = vpop.eup %4321  ;;  %v1901_v59 = vmul.f32 1.442695, %v1849_v36  ;;  %v1801_v57 = vpop.xlane.xlu0 %1800  ;;  %v1967_v17 = vsel %vm123_vm0, %v5186_v49, 0.0  ;;  %4205 = vmatprep.subr.bf16.mxu1 %v5597_v29 }
 0x2d6   :  { %4331 = vpow2.f32 %v1877_v56  ;;  %v1851_v12 = vsub.f32 %v5086_v28, %v1801_v57  ;;  %v1804_v45 = vpop.xlane.xlu1 %1803  ;;  %1968 = vadd.xlane.f32.xlu0 %v1967_v17  ;;  %v1970_v16 = vsel %vm123_vm0, %v5188_v37, 0.0 }
 0x2d7   :  { %4333 = vpow2.f32 %v1901_v59  ;;  %v1852_v38 = vsub.f32 %v5082_v47, %v1804_v45  ;;  %1971 = vadd.xlane.f32.xlu1 %v1970_v16 }
 0x2d8   :  { %v4324_v46 = vpop.eup %4323  ;;  %v1905_v11 = vmul.f32 1.442695, %v1851_v12 }
 0x2d9   :  { %v4326_v62 = vpop.eup %4325  ;;  %v1907_v20 = vmul.f32 1.442695, %v1852_v38  ;;  %v1765_v34 = vpop.xlane.xlu0 %1764  ;;  %v1943_v22 = vsel %vm123_vm0, %v4324_v46, 0.0 }
 0x2da   :  { %4335 = vpow2.f32 %v1905_v11  ;;  %v1839_v28 = vsub.f32 %v5092_v25, %v1765_v34  ;;  %v1768_v19 = vpop.xlane.xlu1 %1767  ;;  %1944 = vadd.xlane.f32.xlu0 %v1943_v22  ;;  %v1946_v39 = vsel %vm123_vm0, %v4326_v62, 0.0  ;;  %v4206_v33 = vpack.c.bf16 %v4326_v62, %v4324_v46 }
 0x2db   :  { %4337 = vpow2.f32 %v1907_v20  ;;  %v1840_v6 = vsub.f32 %v5088_v24, %v1768_v19  ;;  %1947 = vadd.xlane.f32.xlu1 %v1946_v39 }
 0x2dc   :  { %v5203_v47 = vpop.eup %4327  ;;  %v1881_v18 = vmul.f32 1.442695, %v1839_v28  ;;  %4207 = vmatpush3.bf16.msra.mxu1 %v4206_v33 }
 0x2dd   :  { %v5205_v51 = vpop.eup %4329  ;;  %v1883_v35 = vmul.f32 1.442695, %v1840_v6  ;;  %v1988_v63 = vsel %vm123_vm0, %v5203_v47, 0.0  ;;  %4214 = vmatprep.subr.bf16.mxu1 %v5597_v29 }
 0x2de   :  { %4339 = vpow2.f32 %v1881_v18  ;;  %v1786_v25 = vpop.xlane.xlu1 %1785  ;;  %1989 = vadd.xlane.f32.xlu0 %v1988_v63  ;;  %v1952_v36 = vsel %vm123_vm0, %v5205_v51, 0.0 }
 0x2df   :  { %4341 = vpow2.f32 %v1883_v35  ;;  %v1846_v24 = vsub.f32 %v5104_v15, %v1786_v25  ;;  %v1783_v56 = vpop.xlane.xlu0 %1782  ;;  %1953 = vadd.xlane.f32.xlu1 %v1952_v36  ;;  %v5598_v35 = vmov 0.0  }
 0x2e0   :  { %v5213_v59 = vpop.eup %4331  ;;  %v1845_v57 = vsub.f32 %v5106_v26, %v1783_v56  ;;  %3932 = vmatprep.mubr.msk.f32.mxu0 %vm4534_vm1, %v5598_v35  ;;  %3943 = vmatprep.mubr.msk.f32.mxu1 %vm4534_vm1, %v5598_v35 }
 0x2e1   :  { %v5216_v17 = vpop.eup %4333  ;;  %v1895_v12 = vmul.f32 1.442695, %v1846_v24  ;;  %v1949_v45 = vsel %vm123_vm0, %v5213_v59, 0.0 }
 0x2e2   :  { %v1893_v38 = vmul.f32 1.442695, %v1845_v57  ;;  %v1819_v46 = vpop.xlane.xlu1 %1818  ;;  %1950 = vadd.xlane.f32.xlu0 %v1949_v45  ;;  %v1985_v15 = vsel %vm123_vm0, %v5216_v17, 0.0 }
 0x2e3   :  { %4343 = vpow2.f32 %v1895_v12  ;;  %v1857_v26 = vsub.f32 %v5114_v44, %v1819_v46  ;;  %v1822_v62 = vpop.xlane.xlu0 %1821  ;;  %1986 = vadd.xlane.f32.xlu1 %v1985_v15 }
 0x2e4   :  { %v5227_v20 = vpop.eup %4335  ;;  %4345 = vpow2.f32 %v1893_v38  ;;  %v1858_v34 = vsub.f32 %v5112_v55, %v1822_v62 }
 0x2e5   :  { %v5230_v22 = vpop.eup %4337  ;;  %v1917_v28 = vmul.f32 1.442695, %v1857_v26  ;;  %v1991_v19 = vsel %vm123_vm0, %v5227_v20, 0.0 }
 0x2e6   :  { %v1919_v39 = vmul.f32 1.442695, %v1858_v34  ;;  %v1792_v33 = vpop.xlane.xlu1 %1791  ;;  %1992 = vadd.xlane.f32.xlu0 %v1991_v19  ;;  %v1994_v6 = vsel %vm123_vm0, %v5230_v22, 0.0 }
 0x2e7   :  { %4347 = vpow2.f32 %v1917_v28  ;;  %v1848_v44 = vsub.f32 %v5118_v32, %v1792_v33  ;;  %v1789_v18 = vpop.xlane.xlu0 %1788  ;;  %1995 = vadd.xlane.f32.xlu1 %v1994_v6 }
 0x2e8   :  { %v5241_v63 = vpop.eup %4339  ;;  %4349 = vpow2.f32 %v1919_v39  ;;  %v1847_v25 = vsub.f32 %v5122_v0, %v1789_v18 }
 0x2e9   :  { %v5246_v36 = vpop.eup %4341  ;;  %v1899_v32 = vmul.f32 1.442695, %v1848_v44  ;;  %v1955_v24 = vsel %vm123_vm0, %v5241_v63, 0.0 }
 0x2ea   :  { %v1897_v56 = vmul.f32 1.442695, %v1847_v25  ;;  %1956 = vadd.xlane.f32.xlu0 %v1955_v24  ;;  %v1958_v57 = vsel %vm123_vm0, %v5246_v36, 0.0 }
 0x2eb   :  { %4351 = vpow2.f32 %v1899_v32  ;;  %1959 = vadd.xlane.f32.xlu1 %v1958_v57 }
 0x2ec   :  { %4353 = vpow2.f32 %v1897_v56 }
 0x2ed   :  { %v5254_v0 = vpop.eup %4343 }
 0x2ee   :  { %v5256_v45 = vpop.eup %4345  ;;  %v1810_v38 = vpop.xlane.xlu1 %1809  ;;  %v1976_v46 = vsel %vm123_vm0, %v5254_v0, 0.0 }
 0x2ef   :  { %v1854_v15 = vsub.f32 %v5132_v9, %v1810_v38  ;;  %v1807_v26 = vpop.xlane.xlu0 %1806  ;;  %1977 = vadd.xlane.f32.xlu1 %v1976_v46  ;;  %v1973_v62 = vsel %vm123_vm0, %v5256_v45, 0.0 }
 0x2f0   :  { %v1853_v28 = vsub.f32 %v5134_v54, %v1807_v26  ;;  %1974 = vadd.xlane.f32.xlu0 %v1973_v62 }
 0x2f1   :  { %v5266_v19 = vpop.eup %4347  ;;  %v1911_v39 = vmul.f32 1.442695, %v1854_v15 }
 0x2f2   :  { %v5268_v33 = vpop.eup %4349  ;;  %v1909_v6 = vmul.f32 1.442695, %v1853_v28  ;;  %v1816_v44 = vpop.xlane.xlu1 %1815  ;;  %v2009_v9 = vsel %vm123_vm0, %v5266_v19, 0.0 }
 0x2f3   :  { %4355 = vpow2.f32 %v1911_v39  ;;  %v1856_v18 = vsub.f32 %v5140_v60, %v1816_v44  ;;  %2010 = vadd.xlane.f32.xlu1 %v2009_v9  ;;  %v1813_v25 = vpop.xlane.xlu0 %1812  ;;  %v2012_v32 = vsel %vm123_vm0, %v5268_v33, 0.0 }
 0x2f4   :  { %4357 = vpow2.f32 %v1909_v6  ;;  %v1855_v24 = vsub.f32 %v5142_v43, %v1813_v25  ;;  %2013 = vadd.xlane.f32.xlu0 %v2012_v32 }
 0x2f5   :  { %v5278_v56 = vpop.eup %4351  ;;  %v1915_v57 = vmul.f32 1.442695, %v1856_v18 }
 0x2f6   :  { %v5280_v38 = vpop.eup %4353  ;;  %v1913_v46 = vmul.f32 1.442695, %v1855_v24  ;;  %v1828_v15 = vpop.xlane.xlu1 %1827  ;;  %v1982_v60 = vsel %vm123_vm0, %v5278_v56, 0.0 }
 0x2f7   :  { %4359 = vpow2.f32 %v1915_v57  ;;  %v1860_v26 = vsub.f32 %v5128_v53, %v1828_v15  ;;  %1983 = vadd.xlane.f32.xlu1 %v1982_v60  ;;  %v1825_v62 = vpop.xlane.xlu0 %1824  ;;  %v1979_v28 = vsel %vm123_vm0, %v5280_v38, 0.0 }
 0x2f8   :  { %4361 = vpow2.f32 %v1913_v46  ;;  %v1859_v39 = vsub.f32 %v5130_v27, %v1825_v62  ;;  %1980 = vadd.xlane.f32.xlu0 %v1979_v28 }
 0x2f9   :  { %v1923_v6 = vmul.f32 1.442695, %v1860_v26 }
 0x2fa   :  { %v1921_v44 = vmul.f32 1.442695, %v1859_v39 }
 0x2fb   :  { %4363 = vpow2.f32 %v1923_v6 }
 0x2fc   :  { %4365 = vpow2.f32 %v1921_v44 }
 0x2fd   :  { %v5290_v9 = vpop.eup %4355 }
 0x2fe   :  { %v5292_v18 = vpop.eup %4357  ;;  %v2000_v53 = vsel %vm123_vm0, %v5290_v9, 0.0 }
 0x2ff   :  { %2001 = vadd.xlane.f32.xlu1 %v2000_v53  ;;  %v1997_v25 = vsel %vm123_vm0, %v5292_v18, 0.0 }
 0x300   :  { %1998 = vadd.xlane.f32.xlu0 %v1997_v25 }
 0x301   :  { %v5300_v27 = vpop.eup %4359 }
 0x302   :  { %v5302_v24 = vpop.eup %4361  ;;  %v2006_v57 = vsel %vm123_vm0, %v5300_v27, 0.0 }
 0x303   :  { %2007 = vadd.xlane.f32.xlu1 %v2006_v57  ;;  %v2003_v46 = vsel %vm123_vm0, %v5302_v24, 0.0  ;;  %v5599_v57 = vlaneseq }
 0x304   :  { %2004 = vadd.xlane.f32.xlu0 %v2003_v46 }
 0x305   :  { %v5310_v60 = vpop.eup %4363  ;;  %v2090_v46 = vand.u32 127, %v5599_v57 }
 0x306   :  { %v5312_v26 = vpop.eup %4365  ;;  %v2018_v62 = vsel %vm123_vm0, %v5310_v60, 0.0 }
 0x307   :  { %2019 = vadd.xlane.f32.xlu1 %v2018_v62  ;;  %v2015_v28 = vsel %vm123_vm0, %v5312_v26, 0.0  ;;  %v2095_v15 = vadd.s32 4294967288, %v2090_v46  ;;  %v2102_v62 = vadd.s32 4294967280, %v2090_v46  ;;  %v2109_v54 = vadd.s32 4294967272, %v2090_v46 }
 0x308   :  { %2016 = vadd.xlane.f32.xlu0 %v2015_v28  ;;  %v5322_v34 = vsub.s32 %v2090_v46, %v4705_v7 }
 0x309   :  { %v5325_v11 = vsub.s32 %v2095_v15, %v4705_v7  ;;  %v5331_v57 = vsub.s32 %v2109_v54, %v4705_v7 }
 0x34c   :  { %v1930_v6 = vpop.xlane.xlu1 %1929 }
 0x34d   :  { %4367 = vrcp.f32 %v1930_v6 }
 0x350   :  { %v1927_v44 = vpop.xlane.xlu0 %1926 }
 0x351   :  { %v1936_v53 = vpop.xlane.xlu1 %1935  ;;  %4369 = vrcp.f32 %v1927_v44 }
 0x352   :  { %4371 = vrcp.f32 %v1936_v53  ;;  %v5328_v53 = vsub.s32 %v2102_v62, %v4705_v7 }
 0x354   :  { %v1933_v25 = vpop.xlane.xlu0 %1932 }
 0x355   :  { %4373 = vrcp.f32 %v1933_v25 }
 0x357   :  { %v4368_v32 = vpop.eup %4367 }
 0x358   :  { %v2054_v44 = vmul.f32 0.03125, %v4368_v32 }
 0x35a   :  { %v2099_v16 = vrot.slane %v2054_v44, %v5325_v11  ;;  %v5600_v44 = vpack.c.bf16 %v5205_v51, %v5213_v59 }
 0x35b   :  { %v4370_v43 = vpop.eup %4369  ;;  %v1966_v39 = vpop.xlane.xlu0 %1965 }
 0x35c   :  { %v4372_v28 = vpop.eup %4371  ;;  %v2053_v55 = vmul.f32 0.03125, %v4370_v43  ;;  %v1963_v6 = vpop.xlane.xlu1 %1962 }
 0x35d   :  { %v2056_v10 = vmul.f32 0.03125, %v4372_v28 }
 0x35e   :  { %v2094_v42 = vrot.slane %v2053_v55, %v5322_v34 }
 0x35f   :  { %v4374_v25 = vpop.eup %4373  ;;  %v1942_v46 = vpop.xlane.xlu0 %1941  ;;  %v2113_v15 = vrot.slane %v2056_v10, %v5331_v57 }
 0x360   :  { %v2055_v12 = vmul.f32 0.03125, %v4374_v25  ;;  %4375 = vrcp.f32 %v1942_v46  ;;  %v1939_v43 = vpop.xlane.xlu1 %1938  ;;  %v2101_v7 = vsel %vm2100_vm2, %v2099_v16, %v2094_v42 }
 0x361   :  { %4377 = vrcp.f32 %v1939_v43 }
 0x362   :  { %v2106_v32 = vrot.slane %v2055_v12, %v5328_v53  ;;  %4379 = vrcp.f32 %v1966_v39  ;;  %v5601_v39 = vpack.c.bf16 %v5246_v36, %v5241_v63 }
 0x363   :  { %v1969_v54 = vpop.xlane.xlu0 %1968  ;;  %4381 = vrcp.f32 %v1963_v6 }
 0x364   :  { %v2108_v62 = vsel %vm2107_vm3, %v2106_v32, %v2101_v7  ;;  %v1972_v55 = vpop.xlane.xlu1 %1971  ;;  %4383 = vrcp.f32 %v1969_v54 }
 0x365   :  { %v2115_v28 = vsel %vm2114_vm4, %v2113_v15, %v2108_v62 }
 0x366   :  { %3933 = vmatmul.mubr.msk.f32.vlgmr.msra.gmra.mrb[60].mxu0 %vm123_vm0, %v2115_v28 }
 0x367   :  { %4210 = vmatpush3.bf16.msra.mxu0 %v5600_v44  ;;  %v1945_v12 = vpop.xlane.xlu0 %1944  ;;  %3954 = vmatprep.mubr.msk.f32.mxu0 %vm4534_vm1, %v5598_v35 }
 0x368   :  { %4385 = vrcp.f32 %v1945_v12  ;;  %v1948_v42 = vpop.xlane.xlu1 %1947  ;;  %4211 = vmatprep.subr.bf16.mxu0 %v5597_v29 }
 0x369   :  { %4387 = vrcp.f32 %v1948_v42 }
 0x36a   :  { %v4376_v10 = vpop.eup %4375  ;;  %4389 = vrcp.f32 %v1972_v55 }
 0x36b   :  { %v4378_v16 = vpop.eup %4377  ;;  %4213 = vmatpush3.bf16.msra.mxu0 %v5601_v39  ;;  %v1990_v6 = vpop.xlane.xlu0 %1989  ;;  %v2058_v51 = vmul.f32 0.03125, %v4376_v10 }
 0x36c   :  { %v1954_v25 = vpop.xlane.xlu1 %1953  ;;  %4220 = vmatprep.subr.bf16.mxu0 %v5597_v29  ;;  %v2057_v59 = vmul.f32 0.03125, %v4378_v16  ;;  %v4380_v46 = vpop.eup %4379  ;;  %4391 = vrcp.f32 %v1990_v6 }
 0x36d   :  { %v4382_v32 = vpop.eup %4381  ;;  %v2199_v62 = vrot.slane %v2058_v51, %v5325_v11  ;;  %v2066_v55 = vmul.f32 0.03125, %v4380_v46 }
 0x36e   :  { %v4384_v7 = vpop.eup %4383  ;;  %v2195_v63 = vrot.slane %v2057_v59, %v5322_v34  ;;  %v2065_v12 = vmul.f32 0.03125, %v4382_v32 }
 0x36f   :  { %v1951_v43 = vpop.xlane.xlu0 %1950  ;;  %v2067_v39 = vmul.f32 0.03125, %v4384_v7  ;;  %v2389_v59 = vrot.slane %v2066_v55, %v5325_v11 }
 0x370   :  { %4393 = vrcp.f32 %v1951_v43  ;;  %v1987_v15 = vpop.xlane.xlu1 %1986  ;;  %v2200_v43 = vsel %vm2100_vm2, %v2199_v62, %v2195_v63  ;;  %v5602_v63 = vpack.c.bf16 %v5170_v2, %v5172_v4  ;;  %v5603_v4 = vpack.c.bf16 %v5188_v37, %v5186_v49 }
 0x371   :  { %4395 = vrcp.f32 %v1987_v15 }
 0x372   :  { %v4386_v54 = vpop.eup %4385  ;;  %4397 = vrcp.f32 %v1954_v25  ;;  %v2385_v25 = vrot.slane %v2065_v12, %v5322_v34 }
 0x373   :  { %v4388_v36 = vpop.eup %4387  ;;  %v2059_v28 = vmul.f32 0.03125, %v4386_v54  ;;  %v1993_v44 = vpop.xlane.xlu0 %1992 }
 0x374   :  { %v2060_v42 = vmul.f32 0.03125, %v4388_v36  ;;  %4399 = vrcp.f32 %v1993_v44  ;;  %v1996_v10 = vpop.xlane.xlu1 %1995  ;;  %v4390_v16 = vpop.eup %4389  ;;  %v2390_v44 = vsel %vm2100_vm2, %v2389_v59, %v2385_v25 }
 0x375   :  { %v2204_v6 = vrot.slane %v2059_v28, %v5328_v53  ;;  %4401 = vrcp.f32 %v1996_v10  ;;  %v2068_v32 = vmul.f32 0.03125, %v4390_v16  ;;  %v2394_v28 = vrot.slane %v2067_v39, %v5328_v53 }
 0x376   :  { %v2209_v51 = vrot.slane %v2060_v42, %v5331_v57  ;;  %v4392_v7 = vpop.eup %4391 }
 0x377   :  { %v2205_v46 = vsel %vm2107_vm3, %v2204_v6, %v2200_v43  ;;  %v1957_v15 = vpop.xlane.xlu0 %1956  ;;  %v2399_v12 = vrot.slane %v2068_v32, %v5331_v57  ;;  %v2395_v6 = vsel %vm2107_vm3, %v2394_v28, %v2390_v44 }
 0x378   :  { %4403 = vrcp.f32 %v1957_v15  ;;  %v1960_v54 = vpop.xlane.xlu1 %1959  ;;  %v2210_v36 = vsel %vm2114_vm4, %v2209_v51, %v2205_v46  ;;  %v2074_v51 = vmul.f32 0.03125, %v4392_v7 }
 0x379   :  { %4405 = vrcp.f32 %v1960_v54  ;;  %3944 = vmatmul.mubr.msk.f32.vlgmr.msra.gmra.mrb[68].mxu1 %vm123_vm0, %v2210_v36  ;;  %v2400_v36 = vsel %vm2114_vm4, %v2399_v12, %v2395_v6 }
 0x37a   :  { %v4394_v62 = vpop.eup %4393  ;;  %4216 = vmatpush3.bf16.msra.mxu1 %v5602_v63  ;;  %3965 = vmatprep.mubr.msk.f32.mxu1 %vm4534_vm1, %v5598_v35  ;;  %v2579_v37 = vrot.slane %v2074_v51, %v5325_v11  ;;  %v5604_v63 = vpack.c.bf16 %v5203_v47, %v5216_v17 }
 0x37b   :  { %v4396_v55 = vpop.eup %4395  ;;  %4217 = vmatprep.subr.bf16.mxu1 %v5597_v29  ;;  %v2061_v2 = vmul.f32 0.03125, %v4394_v62 }
 0x37c   :  { %v2073_v42 = vmul.f32 0.03125, %v4396_v55  ;;  %v1978_v10 = vpop.xlane.xlu1 %1977  ;;  %v4398_v16 = vpop.eup %4397 }
 0x37d   :  { %v1975_v39 = vpop.xlane.xlu0 %1974  ;;  %4407 = vrcp.f32 %v1978_v10  ;;  %v2062_v59 = vmul.f32 0.03125, %v4398_v16  ;;  %v2290_v62 = vrot.slane %v2061_v2, %v5322_v34  ;;  %v5605_v2 = vpack.c.bf16 %v5230_v22, %v5227_v20 }
 0x37e   :  { %v4400_v43 = vpop.eup %4399  ;;  %4219 = vmatpush3.bf16.msra.mxu1 %v5603_v4  ;;  %4409 = vrcp.f32 %v1975_v39  ;;  %v2575_v25 = vrot.slane %v2073_v42, %v5322_v34  ;;  %v5607_v20 = vpack.c.bf16 %v5268_v33, %v5266_v19  ;;  %v5608_v33 = vpack.c.bf16 %v5278_v56, %v5280_v38 }
 0x37f   :  { %v4402_v46 = vpop.eup %4401  ;;  %v2075_v15 = vmul.f32 0.03125, %v4400_v43  ;;  %4226 = vmatprep.subr.bf16.mxu1 %v5597_v29  ;;  %v2294_v12 = vrot.slane %v2062_v59, %v5325_v11 }
 0x380   :  { %v2076_v32 = vmul.f32 0.03125, %v4402_v46  ;;  %v2011_v54 = vpop.xlane.xlu1 %2010  ;;  %v2580_v42 = vsel %vm2100_vm2, %v2579_v37, %v2575_v25  ;;  %v5609_v37 = vpack.c.bf16 %v5310_v60, %v5312_v26 }
 0x381   :  { %v2584_v7 = vrot.slane %v2075_v15, %v5328_v53  ;;  %4411 = vrcp.f32 %v2011_v54  ;;  %3966 = vmatmul.mubr.msk.f32.vlgmr.msra.gmra.mrb[70].mxu1 %vm123_vm0, %v2400_v36  ;;  %v2014_v28 = vpop.xlane.xlu0 %2013  ;;  %v2295_v43 = vsel %vm2100_vm2, %v2294_v12, %v2290_v62 }
 0x382   :  { %v4404_v49 = vpop.eup %4403  ;;  %4228 = vmatpush3.bf16.msra.mxu1 %v5604_v63  ;;  %4413 = vrcp.f32 %v2014_v28  ;;  %3987 = vmatprep.mubr.msk.f32.mxu1 %vm4534_vm1, %v5598_v35  ;;  %v2589_v10 = vrot.slane %v2076_v32, %v5331_v57  ;;  %v5606_v32 = vpack.c.bf16 %v5254_v0, %v5256_v45 }
 0x383   :  { %v4406_v55 = vpop.eup %4405  ;;  %v2063_v44 = vmul.f32 0.03125, %v4404_v49  ;;  %4229 = vmatprep.subr.bf16.mxu1 %v5597_v29  ;;  %v2585_v17 = vsel %vm2107_vm3, %v2584_v7, %v2580_v42 }
 0x384   :  { %v2064_v16 = vmul.f32 0.03125, %v4406_v55  ;;  %v1984_v39 = vpop.xlane.xlu1 %1983  ;;  %v2590_v15 = vsel %vm2114_vm4, %v2589_v10, %v2585_v17 }
 0x385   :  { %v2299_v6 = vrot.slane %v2063_v44, %v5328_v53  ;;  %4415 = vrcp.f32 %v1984_v39  ;;  %v1981_v47 = vpop.xlane.xlu0 %1980 }
 0x386   :  { %v2304_v51 = vrot.slane %v2064_v16, %v5331_v57  ;;  %4231 = vmatpush3.bf16.msra.mxu1 %v5605_v2  ;;  %4417 = vrcp.f32 %v1981_v47 }
 0x387   :  { %4238 = vmatprep.subr.bf16.mxu1 %v5597_v29  ;;  %v2300_v4 = vsel %vm2107_vm3, %v2299_v6, %v2295_v43  ;;  %v4408_v46 = vpop.eup %4407 }
 0x388   :  { %v2305_v59 = vsel %vm2114_vm4, %v2304_v51, %v2300_v4  ;;  %v4410_v25 = vpop.eup %4409  ;;  %v2070_v36 = vmul.f32 0.03125, %v4408_v46  ;;  %v5610_v46 = vpack.c.bf16 %v5290_v9, %v5292_v18 }
 0x389   :  { %3988 = vmatmul.mubr.msk.f32.vlgmr.msra.gmra.mrb[72].mxu1 %vm123_vm0, %v2590_v15  ;;  %3955 = vmatmul.mubr.msk.f32.vlgmr.msra.gmra.mrb[62].mxu0 %vm123_vm0, %v2305_v59  ;;  %v2069_v7 = vmul.f32 0.03125, %v4410_v25 }
 0x38a   :  { %4222 = vmatpush3.bf16.msra.mxu0 %v5606_v32  ;;  %4240 = vmatpush3.bf16.msra.mxu1 %v5607_v20  ;;  %v2484_v44 = vrot.slane %v2070_v36, %v5325_v11 }
 0x38b   :  { %v4412_v22 = vpop.eup %4411  ;;  %4223 = vmatprep.subr.bf16.mxu0 %v5597_v29  ;;  %4241 = vmatprep.subr.bf16.mxu1 %v5597_v29  ;;  %v2480_v12 = vrot.slane %v2069_v7, %v5322_v34 }
 0x38c   :  { %v4414_v54 = vpop.eup %4413  ;;  %v2081_v28 = vmul.f32 0.03125, %v4412_v22  ;;  %v2002_v49 = vpop.xlane.xlu1 %2001  ;;  %3976 = vmatprep.mubr.msk.f32.mxu0 %vm4534_vm1, %v5598_v35  ;;  %4009 = vmatprep.mubr.msk.f32.mxu1 %vm4534_vm1, %v5598_v35 }
 0x38d   :  { %v2082_v0 = vmul.f32 0.03125, %v4414_v54  ;;  %4419 = vrcp.f32 %v2002_v49  ;;  %v1999_v45 = vpop.xlane.xlu0 %1998  ;;  %v2485_v16 = vsel %vm2100_vm2, %v2484_v44, %v2480_v12  ;;  %v5611_v54 = vpack.c.bf16 %v5300_v27, %v5302_v24  ;;  %v5626_v12 = vld [vmem:[#allocation13_spill] sm:$0xff] }
 0x38e   :  { %v2765_v19 = vrot.slane %v2081_v28, %v5322_v34  ;;  %4225 = vmatpush3.bf16.msra.mxu0 %v5608_v33  ;;  %4243 = vmatpush3.bf16.msra.mxu1 %v5609_v37  ;;  %4421 = vrcp.f32 %v1999_v45 }
 0x38f   :  { %v4416_v62 = vpop.eup %4415  ;;  %v2769_v63 = vrot.slane %v2082_v0, %v5325_v11  ;;  %4232 = vmatprep.subr.bf16.mxu0 %v5597_v29  ;;  %4250 = vmatprep.subr.bf16.mxu1 %v5597_v29 }
 0x390   :  { %v4418_v55 = vpop.eup %4417  ;;  %v2072_v42 = vmul.f32 0.03125, %v4416_v62  ;;  %v2008_v56 = vpop.xlane.xlu1 %2007 }
 0x391   :  { %v2770_v38 = vsel %vm2100_vm2, %v2769_v63, %v2765_v19  ;;  %v2071_v10 = vmul.f32 0.03125, %v4418_v55  ;;  %4423 = vrcp.f32 %v2008_v56  ;;  %v2005_v60 = vpop.xlane.xlu0 %2004  ;;  %v5612_v19 = vpack.c.bf16 %v4754_v41, %v4751_v40  ;;  %v5628_v56 = vld [vmem:[#allocation25_spill] sm:$0xff] }
 0x392   :  { %4425 = vrcp.f32 %v2005_v60  ;;  %v2494_v39 = vrot.slane %v2072_v42, %v5331_v57  ;;  %v5615_v40 = vpack.c.bf16 %v4818_v48, %v4810_v31  ;;  %v5618_v48 = vpack.c.bf16 %v4870_v13, %v4739_v30  ;;  %v5622_v30 = vld [vmem:[#allocation21_spill] sm:$0xff]  ;;  %v5623_v13 = vld [vmem:[#allocation20_spill] sm:$0xff]  ;;  %v5631_v60 = vld [vmem:[#allocation19_spill] sm:$0xff] }
 0x393   :  { %v2489_v26 = vrot.slane %v2071_v10, %v5328_v53  ;;  %v5624_v63 = vpack.c.bf16 %v5622_v30, %v5623_v13 }
 0x394   :  { %v2020_v6 = vpop.xlane.xlu1 %2019 }
 0x395   :  { %4427 = vrcp.f32 %v2020_v6  ;;  %v2017_v47 = vpop.xlane.xlu0 %2016  ;;  %v2490_v17 = vsel %vm2107_vm3, %v2489_v26, %v2485_v16  ;;  %v5632_v26 = vld [vmem:[#allocation18_spill] sm:$0xff] }
 0x396   :  { %4429 = vrcp.f32 %v2017_v47  ;;  %v2495_v43 = vsel %vm2114_vm4, %v2494_v39, %v2490_v17  ;;  %v5633_v16 = vpack.c.bf16 %v5631_v60, %v5632_v26  ;;  %v5634_v39 = vld [vmem:[#allocation27_spill] sm:$0xff]  ;;  %v5635_v6 = vld [vmem:[#allocation26_spill] sm:$0xff] }
 0x397   :  { %v4420_v51 = vpop.eup %4419  ;;  %3977 = vmatmul.mubr.msk.f32.vlgmr.msra.gmra.mrb[64].mxu0 %vm123_vm0, %v2495_v43  ;;  %v5636_v47 = vpack.c.bf16 %v5634_v39, %v5635_v6 }
 0x398   :  { %v4422_v2 = vpop.eup %4421  ;;  %v2078_v4 = vmul.f32 0.03125, %v4420_v51  ;;  %4234 = vmatpush3.bf16.msra.mxu0 %v5610_v46  ;;  %3998 = vmatprep.mubr.msk.f32.mxu0 %vm4534_vm1, %v5598_v35  ;;  %v5637_v51 = vld [vmem:[#allocation22_spill] sm:$0xff]  ;;  %v5640_v46 = vld [vmem:[#allocation24_spill] sm:$0xff] }
 0x399   :  { %v2077_v15 = vmul.f32 0.03125, %v4422_v2  ;;  %4235 = vmatprep.subr.bf16.mxu0 %v5597_v29  ;;  %v5638_v2 = vld [vmem:[#allocation15_spill] sm:$0xff] }
 0x39a   :  { %v2674_v32 = vrot.slane %v2078_v4, %v5325_v11  ;;  %v5639_v4 = vpack.c.bf16 %v5637_v51, %v5638_v2 }
 0x39b   :  { %v4424_v59 = vpop.eup %4423  ;;  %v2670_v20 = vrot.slane %v2077_v15, %v5322_v34  ;;  %v5641_v15 = vld [vmem:[#allocation23_spill] sm:$0xff] }
 0x39c   :  { %v4426_v25 = vpop.eup %4425  ;;  %v2080_v22 = vmul.f32 0.03125, %v4424_v59  ;;  %4237 = vmatpush3.bf16.msra.mxu0 %v5611_v54  ;;  %v5642_v59 = vpack.c.bf16 %v5640_v46, %v5641_v15 }
 0x39d   :  { %v2079_v36 = vmul.f32 0.03125, %v4426_v25  ;;  %4244 = vmatprep.subr.bf16.mxu0 %v5597_v29  ;;  %v2675_v28 = vsel %vm2100_vm2, %v2674_v32, %v2670_v20 }
 0x39e   :  { %v2684_v49 = vrot.slane %v2080_v22, %v5331_v57 }
 0x39f   :  { %v4428_v9 = vpop.eup %4427  ;;  %v2679_v18 = vrot.slane %v2079_v36, %v5328_v53 }
 0x3a0   :  { %v4430_v7 = vpop.eup %4429  ;;  %v2084_v0 = vmul.f32 0.03125, %v4428_v9 }
 0x3a1   :  { %v2083_v11 = vmul.f32 0.03125, %v4430_v7  ;;  %v2680_v34 = vsel %vm2107_vm3, %v2679_v18, %v2675_v28 }
 0x3a2   :  { %v2685_v45 = vsel %vm2114_vm4, %v2684_v49, %v2680_v34  ;;  %v2779_v24 = vrot.slane %v2084_v0, %v5331_v57  ;;  %v5614_v57 = vpack.c.bf16 %v4796_v5, %v4790_v3  ;;  %v5617_v3 = vpack.c.bf16 %v4856_v8, %v4849_v61  ;;  %v5620_v8 = vld [vmem:[#allocation14_spill] sm:$0xff] }
 0x3a3   :  { %v2774_v27 = vrot.slane %v2083_v11, %v5328_v53  ;;  %3999 = vmatmul.mubr.msk.f32.vlgmr.msra.gmra.mrb[66].mxu0 %vm123_vm0, %v2685_v45  ;;  %v5613_v53 = vpack.c.bf16 %v4780_v58, %v4771_v52  ;;  %v5616_v58 = vpack.c.bf16 %v4826_v14, %v4725_v23  ;;  %v5619_v23 = vpack.c.bf16 %v4893_v50, %v4884_v1 }
 0x3a4   :  { %4246 = vmatpush3.bf16.msra.mxu0 %v5612_v19  ;;  %4020 = vmatprep.mubr.msk.f32.mxu0 %vm4534_vm1, %v5598_v35  ;;  %v5621_v62 = vpack.c.bf16 %v4950_v21, %v5620_v8  ;;  %v5625_v21 = vld [vmem:[#allocation17_spill] sm:$0xff] }
 0x3a5   :  { %4247 = vmatprep.subr.bf16.mxu0 %v5597_v29  ;;  %v2775_v33 = vsel %vm2107_vm3, %v2774_v27, %v2770_v38  ;;  %v5627_v42 = vpack.c.bf16 %v5625_v21, %v5626_v12  ;;  %v5629_v38 = vld [vmem:[#allocation16_spill] sm:$0xff] }
 0x3a6   :  { %v2780_v37 = vsel %vm2114_vm4, %v2779_v24, %v2775_v33  ;;  %v5630_v10 = vpack.c.bf16 %v5628_v56, %v5629_v38 }
 0x3a7   :  { %4010 = vmatmul.mubr.msk.f32.vlgmr.msra.gmra.mrb[74].mxu1 %vm123_vm0, %v2780_v37 }
 0x3a8   :  { %4249 = vmatpush3.bf16.msra.mxu0 %v5613_v53  ;;  %4252 = vmatpush3.bf16.msra.mxu1 %v5614_v57 }
 0x3a9   :  { %4253 = vmatprep.subr.bf16.mxu1 %v5597_v29  ;;  %4256 = vmatprep.subr.bf16.mxu0 %v5597_v29 }
 0x3aa   :  { %4031 = vmatprep.mubr.msk.f32.mxu1 %vm4534_vm1, %v5598_v35 }
 0x3ac   :  { %4255 = vmatpush3.bf16.msra.mxu1 %v5615_v40 }
 0x3ad   :  { %4262 = vmatprep.subr.bf16.mxu1 %v5597_v29 }
 0x439   :  { %v2184_v41 = vpop.f32.mrb[60].mxu0 }
 0x43a   :  { %v3934_v52 = vpop.f32.mrb[61].mxu0  ;;  %4021 = vmatmul.mubr.msk.f32.vlgmr.msra.gmra.mrb[68].mxu0 %vm123_vm0, %v2184_v41 }
 0x43b   :  { %4258 = vmatpush3.bf16.msra.mxu0 %v5616_v58  ;;  %4042 = vmatprep.mubr.msk.f32.mxu0 %vm4534_vm1, %v5598_v35 }
 0x43c   :  { %4259 = vmatprep.subr.bf16.mxu0 %v5597_v29 }
 0x43f   :  { %4261 = vmatpush3.bf16.msra.mxu0 %v5617_v3 }
 0x440   :  { %4268 = vmatprep.subr.bf16.mxu0 %v5597_v29 }
 0x44c   :  { %v2279_v5 = vpop.f32.mrb[68].mxu1 }
 0x44d   :  { %v3945_v31 = vpop.f32.mrb[69].mxu1  ;;  %4032 = vmatmul.mubr.msk.f32.vlgmr.msra.gmra.mrb[76].mxu1 %vm123_vm0, %v2279_v5 }
 0x44e   :  { %4264 = vmatpush3.bf16.msra.mxu1 %v5618_v48  ;;  %4053 = vmatprep.mubr.msk.f32.mxu1 %vm4534_vm1, %v5598_v35 }
 0x44f   :  { %4265 = vmatprep.subr.bf16.mxu1 %v5597_v29 }
 0x452   :  { %4267 = vmatpush3.bf16.msra.mxu1 %v5619_v23 }
 0x453   :  { %4274 = vmatprep.subr.bf16.mxu1 %v5597_v29 }
 0x454   :  { %v2469_v14 = vpop.f32.mrb[70].mxu1 }
 0x455   :  { %v3967_v61 = vpop.f32.mrb[71].mxu1  ;;  %4054 = vmatmul.mubr.msk.f32.vlgmr.msra.gmra.mrb[78].mxu1 %vm123_vm0, %v2469_v14 }
 0x456   :  { %4276 = vmatpush3.bf16.msra.mxu1 %v5621_v62  ;;  %4075 = vmatprep.mubr.msk.f32.mxu1 %vm4534_vm1, %v5598_v35 }
 0x457   :  { %4277 = vmatprep.subr.bf16.mxu1 %v5597_v29 }
 0x45a   :  { %4279 = vmatpush3.bf16.msra.mxu1 %v5624_v63 }
 0x45b   :  { %4286 = vmatprep.subr.bf16.mxu1 %v5597_v29 }
 0x45c   :  { %v2659_v50 = vpop.f32.mrb[72].mxu1  ;;  %v2374_v1 = vpop.f32.mrb[62].mxu0 }
 0x45d   :  { %v3989_v55 = vpop.f32.mrb[73].mxu1  ;;  %4076 = vmatmul.mubr.msk.f32.vlgmr.msra.gmra.mrb[80].mxu1 %vm123_vm0, %v2659_v50  ;;  %v3956_v44 = vpop.f32.mrb[63].mxu0  ;;  %4043 = vmatmul.mubr.msk.f32.vlgmr.msra.gmra.mrb[70].mxu0 %vm123_vm0, %v2374_v1 }
 0x45e   :  { %4270 = vmatpush3.bf16.msra.mxu0 %v5627_v42  ;;  %4288 = vmatpush3.bf16.msra.mxu1 %v5630_v10 }
 0x45f   :  { %4271 = vmatprep.subr.bf16.mxu0 %v5597_v29  ;;  %4289 = vmatprep.subr.bf16.mxu1 %v5597_v29 }
 0x460   :  { %4064 = vmatprep.mubr.msk.f32.mxu0 %vm4534_vm1, %v5598_v35  ;;  %4097 = vmatprep.mubr.msk.f32.mxu1 %vm4534_vm1, %v5598_v35 }
 0x462   :  { %4273 = vmatpush3.bf16.msra.mxu0 %v5633_v16  ;;  %4291 = vmatpush3.bf16.msra.mxu1 %v5636_v47 }
 0x463   :  { %4280 = vmatprep.subr.bf16.mxu0 %v5597_v29 }
 0x46a   :  { %v2564_v17 = vpop.f32.mrb[64].mxu0 }
 0x46b   :  { %v3978_v43 = vpop.f32.mrb[65].mxu0  ;;  %4065 = vmatmul.mubr.msk.f32.vlgmr.msra.gmra.mrb[72].mxu0 %vm123_vm0, %v2564_v17 }
 0x46c   :  { %4282 = vmatpush3.bf16.msra.mxu0 %v5639_v4  ;;  %4086 = vmatprep.mubr.msk.f32.mxu0 %vm4534_vm1, %v5598_v35 }
 0x46d   :  { %4283 = vmatprep.subr.bf16.mxu0 %v5597_v29 }
 0x470   :  { %4285 = vmatpush3.bf16.msra.mxu0 %v5642_v59 }
 0x476   :  { %v2754_v25 = vpop.f32.mrb[66].mxu0 }
 0x477   :  { %v4000_v32 = vpop.f32.mrb[67].mxu0  ;;  %4087 = vmatmul.mubr.msk.f32.vlgmr.msra.gmra.mrb[74].mxu0 %vm123_vm0, %v2754_v25 }
 0x47a   :  { %v2849_v20 = vpop.f32.mrb[74].mxu1 }
 0x47b   :  { %v4011_v22 = vpop.f32.mrb[75].mxu1  ;;  %4098 = vmatmul.mubr.msk.f32.vlgmr.msra.gmra.mrb[82].mxu1 %vm123_vm0, %v2849_v20 }
 0x50d   :  { %v2922_v54 = vpop.f32.mrb[68].mxu0 }
 0x50e   :  { %v4022_v36 = vpop.f32.mrb[69].mxu0 }
 0x520   :  { %v2995_v9 = vpop.f32.mrb[76].mxu1 }
 0x521   :  { %v3445_v18 = vrot.slane %v2995_v9, 7  ;;  %v4033_v35 = vpop.f32.mrb[77].mxu1 }
 0x523   :  { %v3447_v7 = vsel %vm3446_vm5, %v3445_v18, %v2922_v54 }
 0x528   :  { %v3141_v29 = vpop.f32.mrb[78].mxu1 }
 0x529   :  { %v4055_v28 = vpop.f32.mrb[79].mxu1  ;;  %v3451_v27 = vrot.slane %v3141_v29, 5 }
 0x530   :  { %v3287_v49 = vpop.f32.mrb[80].mxu1  ;;  %v3068_v0 = vpop.f32.mrb[70].mxu0 }
 0x531   :  { %v3448_v11 = vrot.slane %v3068_v0, 6  ;;  %v4077_v34 = vpop.f32.mrb[81].mxu1  ;;  %v4044_v45 = vpop.f32.mrb[71].mxu0  ;;  %v3457_v57 = vrot.slane %v3287_v49, 3 }
 0x533   :  { %v3450_v24 = vsel %vm3449_vm6, %v3448_v11, %v3447_v7 }
 0x534   :  { %v3453_v19 = vsel %vm3452_vm7, %v3451_v27, %v3450_v24 }
 0x53e   :  { %v3214_v33 = vpop.f32.mrb[72].mxu0 }
 0x53f   :  { %v3454_v37 = vrot.slane %v3214_v33, 4  ;;  %v4066_v53 = vpop.f32.mrb[73].mxu0 }
 0x541   :  { %v3456_v40 = vsel %vm3455_vm8, %v3454_v37, %v3453_v19 }
 0x542   :  { %v3459_v41 = vsel %vm3458_vm9, %v3457_v57, %v3456_v40 }
 0x54a   :  { %v3360_v52 = vpop.f32.mrb[74].mxu0 }
 0x54b   :  { %v3460_v58 = vrot.slane %v3360_v52, 2  ;;  %v4088_v3 = vpop.f32.mrb[75].mxu0 }
 0x54d   :  { %v3462_v5 = vsel %vm3461_vm10, %v3460_v58, %v3459_v41 }
 0x54e   :  { %v3433_v31 = vpop.f32.mrb[82].mxu1 }
 0x54f   :  { %v3463_v48 = vrot.slane %v3433_v31, 1  ;;  %v4099_v23 = vpop.f32.mrb[83].mxu1 }
 0x551   :  { %v3465_v14 = vsel %vm3464_vm11, %v3463_v48, %v3462_v5 }
 0x552   :  { %3467 = vst.msk [vmem:[#allocation9] sm:$0xff] %vm123_vm0, %v3465_v14 }
 0x553   :  { %4508 = shalt.err (!%p4505_p0)
}
 0x554   :  { %s4509_s12 = scalar_lea.hbm %s5561_s5, 128 }
 0x555   :  { %p4510_p1 = scmp.ne.s32.totalorder %s5561_s5, %s4509_s12  ;;  %p4513_p2 = scmp.lt.u32.totalorder %s4509_s12, %s5561_s5 }
 0x557   :  { %p4515_p3 = pnand %p4513_p2, %p4510_p1 }
 0x559   :  { %4518 = shalt.err (!%p4515_p3)
}
 0x55a   :  { %3477 = dma.vmem_to_hbm [thread:$0]  %s3475_s8, 128, %s5561_s5, [#allocation5]  }
 0x55b   :  { %4523 = dma.done.wait [#allocation5], 128  }
 0x55c   :  { %4524 = vsyncadd [#allocation5], 4294967168 }
 0x55d   :  { %3481 = vsyncpa [#allocation4], 1 }
 0x55e   :  { %3482 = vsyncpa [#allocation7], 1 }
 0x55f   :  { %3483 = vsyncpa [#allocation5], 1 }

</bundles_post_ra>
